<compile_context>
chip_gen: v6e
topology: v6e:2x2x1
jax: 0.10.0
libtpu: 0.0.40
codegen_flags: <defaults>
</compile_context>

<pallas_src>
import functools
import math

import jax
import jax.numpy as jnp
from jax.experimental import pallas as pl
from jax.experimental.pallas import tpu as pltpu


# ------------------------------ fused kernel --------------------------------

def _fused_decoder_kernel(emb_ref, z_ref, l2e_w_ref, l2e_b_ref,
                          wqkv_ref, bqkv_ref, wo_ref, bo_ref,
                          ln1w_ref, ln1b_ref, w1_ref, b1_ref,
                          w2_ref, b2_ref, ln2w_ref, ln2b_ref,
                          outw_ref, outb_ref, logits_ref,
                          *, S, D, nhead, num_layers):
    """One grid step = one batch element; full decoder stack in one body."""
    eps = 1e-5
    g3 = 3 * nhead

    # ---- latent -> embedding, broadcast over the sequence ----
    lat = (jnp.dot(z_ref[0], l2e_w_ref[...],
                   preferred_element_type=jnp.float32) + l2e_b_ref[...])   # (1, D)
    x = emb_ref[...] + lat                                                 # (S, D)

    # ---- causal additive mask built in-kernel (exact -inf, matches torch) ----
    row = jax.lax.broadcasted_iota(jnp.int32, (S, S), 0)
    col = jax.lax.broadcasted_iota(jnp.int32, (S, S), 1)
    neg_mask = jnp.where(col > row,
                         jnp.float32(-jnp.inf), jnp.float32(0.0))          # (S, S)

    # ---- num_layers x TransformerEncoderLayer (post-norm, ReLU FFN) ----
    for l in range(num_layers):
        # Per-head QKV projection: one batched matmul, head split lives on the
        # leading (batch) axis of the weights -> no lane relayout at runtime.
        xb = jnp.broadcast_to(x[None], (g3, S, D))
        qkv = jnp.einsum('gmd,gdk->gmk', xb, wqkv_ref[l],
                         preferred_element_type=jnp.float32) + bqkv_ref[l]  # (3H, S, hd)
        q = qkv[:nhead]            # Q already pre-scaled by 1/sqrt(hd) in weights
        k = qkv[nhead:2 * nhead]
        v = qkv[2 * nhead:]

        # Scores / softmax / context — all heads batched on the leading axis.
        s = jnp.einsum('gqd,gkd->gqk', q, k,
                       preferred_element_type=jnp.float32)                  # (H, S, S)
        s = s + neg_mask[None]
        s = s - jnp.max(s, axis=-1, keepdims=True)
        p = jnp.exp(s)
        p = p * pl.reciprocal(jnp.sum(p, axis=-1, keepdims=True), approx=False)
        ctx = jnp.einsum('gqk,gkd->gqd', p, v,
                         preferred_element_type=jnp.float32)                # (H, S, hd)

        # Out-projection: batched per-head weight blocks, summed over heads.
        attn = (jnp.einsum('gsf,gfd->gsd', ctx, wo_ref[l],
                           preferred_element_type=jnp.float32).sum(axis=0)
                + bo_ref[l])                                                # (S, D)

        # Residual + LayerNorm1 (biased variance, eps=1e-5).
        y = x + attn
        mu = jnp.mean(y, axis=-1, keepdims=True)
        var = jnp.mean((y - mu) ** 2, axis=-1, keepdims=True)
        y = (y - mu) * jax.lax.rsqrt(var + eps) * ln1w_ref[l] + ln1b_ref[l]

        # Feed-forward (hidden dim zero-padded to 128 lanes — exact math).
        h1 = jnp.dot(y, w1_ref[l], preferred_element_type=jnp.float32) + b1_ref[l]
        h1 = jnp.maximum(h1, 0.0)
        h2 = jnp.dot(h1, w2_ref[l], preferred_element_type=jnp.float32) + b2_ref[l]

        # Residual + LayerNorm2.
        zz = y + h2
        mu2 = jnp.mean(zz, axis=-1, keepdims=True)
        var2 = jnp.mean((zz - mu2) ** 2, axis=-1, keepdims=True)
        x = (zz - mu2) * jax.lax.rsqrt(var2 + eps) * ln2w_ref[l] + ln2b_ref[l]

    # ---- vocab projection, padded to 128 lanes (unmasked lane-dense stores) ----
    logits_ref[...] = (jnp.dot(x, outw_ref[...],
                               preferred_element_type=jnp.float32) + outb_ref[...])


def fused_decoder_pallas(params, emb_pe, z3, B, S, D, nhead, num_layers):
    head_dim = D // nhead
    latent = z3.shape[-1]
    n_pad = params["out_w_pad"].shape[1]
    h_pad = params["w1_pad"].shape[-1]

    kernel = functools.partial(_fused_decoder_kernel, S=S, D=D, nhead=nhead,
                               num_layers=num_layers)

    def const_spec(a):
        # Whole-array weight block, same for every grid step.
        return pl.BlockSpec(a.shape, lambda b, n=a.ndim: (0,) * n)

    args = (emb_pe, z3, params["l2e_w_t"], params["l2e_b"],
            params["wqkv_heads"], params["bqkv_heads"],
            params["wo_heads"], params["bo"],
            params["ln1_w"], params["ln1_b"],
            params["w1_pad"], params["b1_pad"],
            params["w2_pad"], params["b2"],
            params["ln2_w"], params["ln2_b"],
            params["out_w_pad"], params["out_b_pad"])

    in_specs = ([pl.BlockSpec((S, D), lambda b: (b, 0)),          # per-batch rows
                 pl.BlockSpec((1, 1, latent), lambda b: (b, 0, 0))]  # per-batch latent
                + [const_spec(a) for a in args[2:]])
    out_spec = pl.BlockSpec((S, n_pad), lambda b: (b, 0))

    # Advisory cost estimate for XLA scheduling around the fused call.
    flops_per_batch = (2 * latent * D
                       + num_layers * (2 * S * D * 3 * D            # qkv
                                       + 4 * nhead * S * S * head_dim  # scores + pv
                                       + 2 * S * nhead * head_dim * D  # out proj
                                       + 4 * S * D * h_pad)            # ffn
                       + 2 * S * D * n_pad)                            # vocab
    bytes_accessed = int(sum(a.size * a.dtype.itemsize for a in args)
                         + B * S * n_pad * 4)
    cost = pl.CostEstimate(flops=int(B * flops_per_batch),
                           transcendentals=int(B * num_layers * nhead * S * S),
                           bytes_accessed=bytes_accessed)

    return pl.pallas_call(
        kernel,
        out_shape=jax.ShapeDtypeStruct((B * S, n_pad), jnp.float32),
        grid=(B,),
        in_specs=in_specs,
        out_specs=out_spec,
        compiler_params=pltpu.CompilerParams(
            dimension_semantics=("parallel",),        # shards batch over v7x's 2 TCs
            vmem_limit_bytes=32 * 1024 * 1024),
        cost_estimate=cost,
    )(*args)


# ------------------------------ plain-JAX glue -------------------------------

def generate_square_subsequent_mask(sz):
    i = jnp.arange(sz)
    return jnp.where(i[None, :] > i[:, None], -jnp.inf, 0.0).astype(jnp.float32)


def make_positional_encoding(seq_len, d_model):
    position = jnp.arange(seq_len, dtype=jnp.float32)[:, None]
    div_term = jnp.exp(
        jnp.arange(0, d_model, 2, dtype=jnp.float32) * (-math.log(10000.0) / d_model))
    pe = jnp.zeros((seq_len, d_model), jnp.float32)
    pe = pe.at[:, 0::2].set(jnp.sin(position * div_term))
    pe = pe.at[:, 1::2].set(jnp.cos(position * div_term))
    return pe


def xavier_uniform(key, shape):
    fan_out, fan_in = shape
    bound = math.sqrt(6.0 / (fan_in + fan_out))
    return jax.random.uniform(key, shape, jnp.float32, -bound, bound)


def init_params(key, vocab_size, emb, hidden, latent, num_layers, nhead):
    head_dim = emb // nhead
    scale = 1.0 / math.sqrt(head_dim)          # folded into Q weights/bias
    n_pad = ((vocab_size + 127) // 128) * 128
    h_pad = ((hidden + 127) // 128) * 128
    keys = jax.random.split(key, 3 + num_layers)
    p = {}

    # nn.Embedding: uniform(-0.001, 0.001)
    p["embedding"] = jax.random.uniform(
        keys[0], (vocab_size, emb), jnp.float32, -0.001, 0.001)
    # latent_to_embedding: Linear(latent -> emb), xavier W, bias 0.01
    p["l2e_w_t"] = xavier_uniform(keys[1], (emb, latent)).T          # (latent, emb)
    p["l2e_b"] = jnp.full((1, emb), 0.01, jnp.float32)
    # outputs2vocab: Linear(emb -> vocab), padded to lane-dense 128 columns
    out_w_t = xavier_uniform(keys[2], (vocab_size, emb)).T           # (emb, vocab)
    p["out_w_pad"] = jnp.pad(out_w_t, ((0, 0), (0, n_pad - vocab_size)))
    p["out_b_pad"] = jnp.pad(jnp.full((1, vocab_size), 0.01, jnp.float32),
                             ((0, 0), (0, n_pad - vocab_size)))

    wqkv_l, bqkv_l, wo_l, bo_l, w1_l, b1_l, w2_l, b2_l = ([] for _ in range(8))
    for i in range(num_layers):
        lk = jax.random.split(keys[3 + i], 4)
        wqkv = xavier_uniform(lk[0], (3 * emb, emb))     # MHA in_proj_weight (3D, D)
        wo = xavier_uniform(lk[1], (emb, emb))           # MHA out_proj.weight
        w1 = xavier_uniform(lk[2], (hidden, emb))        # linear1.weight
        w2 = xavier_uniform(lk[3], (emb, hidden))        # linear2.weight

        def to_heads(w):
            # (head*hd out-rows, D in-cols) -> (nhead, D, hd) so q_h = x @ W_h
            return jnp.transpose(w.reshape(nhead, head_dim, emb), (0, 2, 1))

        wq, wk, wv = wqkv[:emb], wqkv[emb:2 * emb], wqkv[2 * emb:]
        wqkv_l.append(jnp.concatenate(
            [to_heads(wq) * scale, to_heads(wk), to_heads(wv)], axis=0))   # (3H, D, hd)
        bqkv = jnp.zeros((3 * emb,), jnp.float32)        # in_proj_bias default zeros
        bq = (bqkv[:emb] * scale).reshape(nhead, 1, head_dim)
        bk = bqkv[emb:2 * emb].reshape(nhead, 1, head_dim)
        bv = bqkv[2 * emb:].reshape(nhead, 1, head_dim)
        bqkv_l.append(jnp.concatenate([bq, bk, bv], axis=0))               # (3H, 1, hd)

        wo_l.append(wo.T.reshape(nhead, head_dim, emb))   # per-head (hd, D) blocks
        bo_l.append(jnp.full((1, emb), 0.01, jnp.float32))

        # FFN, hidden zero-padded to 128 lanes (exact: pad cols/bias 0, pad rows 0).
        w1_l.append(jnp.pad(w1.T, ((0, 0), (0, h_pad - hidden))))          # (D, Hp)
        b1_l.append(jnp.pad(jnp.full((1, hidden), 0.01, jnp.float32),
                            ((0, 0), (0, h_pad - hidden))))
        w2_l.append(jnp.pad(w2.T, ((0, h_pad - hidden), (0, 0))))          # (Hp, D)
        b2_l.append(jnp.full((1, emb), 0.01, jnp.float32))

    p["wqkv_heads"] = jnp.stack(wqkv_l)   # (L, 3*nhead, D, hd)
    p["bqkv_heads"] = jnp.stack(bqkv_l)   # (L, 3*nhead, 1, hd)
    p["wo_heads"] = jnp.stack(wo_l)       # (L, nhead, hd, D)
    p["bo"] = jnp.stack(bo_l)             # (L, 1, D)
    p["w1_pad"] = jnp.stack(w1_l)         # (L, D, Hpad)
    p["b1_pad"] = jnp.stack(b1_l)         # (L, 1, Hpad)
    p["w2_pad"] = jnp.stack(w2_l)         # (L, Hpad, D)
    p["b2"] = jnp.stack(b2_l)             # (L, 1, D)
    p["ln1_w"] = jnp.ones((num_layers, 1, emb), jnp.float32)
    p["ln1_b"] = jnp.zeros((num_layers, 1, emb), jnp.float32)
    p["ln2_w"] = jnp.ones((num_layers, 1, emb), jnp.float32)
    p["ln2_b"] = jnp.zeros((num_layers, 1, emb), jnp.float32)
    return p


def transformer_decoder_forward(params, z, dec_input_ids, look_ahead_mask,
                                nhead, vocab_size):
    """Mirrors Transformer_Decoder.forward (eval mode, src_key_padding_mask=None)."""
    # TODO(synk): look_ahead_mask is assumed to be the standard causal mask
    # (generate_square_subsequent_mask); it is regenerated inside the kernel.
    # TODO(synk): src_key_padding_mask path not implemented (forward uses None).
    del look_ahead_mask
    B, S = dec_input_ids.shape
    D = params["embedding"].shape[1]
    L = params["wqkv_heads"].shape[0]
    emb = params["embedding"][dec_input_ids]                 # (B, S, D) gather
    pe = make_positional_encoding(S, D)                      # (S, D)
    emb_pe = (emb + pe[None, :, :]).reshape(B * S, D)
    z3 = z.reshape(B, 1, -1)
    logits_pad = fused_decoder_pallas(params, emb_pe, z3, B, S, D, nhead, L)
    return logits_pad[:, :vocab_size].reshape(B, S, vocab_size)


# ---------------------------------- main -------------------------------------

if __name__ == "__main__":
    vocab_size = 50
    embedding_size = 32
    hidden_size = 64
    latent_size = 16
    num_layers = 2
    nhead = 4
    B, S = 2, 8

    key = jax.random.PRNGKey(0)
    kp, kz, kid = jax.random.split(key, 3)
    params = init_params(kp, vocab_size, embedding_size, hidden_size,
                         latent_size, num_layers, nhead)
    z = jax.random.normal(kz, (B, latent_size), jnp.float32)
    dec_input_ids = jax.random.randint(kid, (B, S), 0, vocab_size)
    look_ahead_mask = generate_square_subsequent_mask(S)

    logits = transformer_decoder_forward(params, z, dec_input_ids,
                                         look_ahead_mask, nhead, vocab_size)
    jax.block_until_ready(logits)
    assert logits.shape == (B, S, vocab_size)
    assert bool(jnp.all(jnp.isfinite(logits)))
    print("KERNEL_OK")
</pallas_src>

<mosaic_0001>
module attributes {stable_mosaic.version = 11 : i64} {
  func.func @_fused_decoder_kernel(%arg0: i32, %arg1: memref<8x32xf32, #tpu.memory_space<vmem>>, %arg2: memref<1x1x16xf32, #tpu.memory_space<vmem>>, %arg3: memref<16x32xf32, #tpu.memory_space<vmem>>, %arg4: memref<1x32xf32, #tpu.memory_space<vmem>>, %arg5: memref<2x12x32x8xf32, #tpu.memory_space<vmem>>, %arg6: memref<2x12x1x8xf32, #tpu.memory_space<vmem>>, %arg7: memref<2x4x8x32xf32, #tpu.memory_space<vmem>>, %arg8: memref<2x1x32xf32, #tpu.memory_space<vmem>>, %arg9: memref<2x1x32xf32, #tpu.memory_space<vmem>>, %arg10: memref<2x1x32xf32, #tpu.memory_space<vmem>>, %arg11: memref<2x32x128xf32, #tpu.memory_space<vmem>>, %arg12: memref<2x1x128xf32, #tpu.memory_space<vmem>>, %arg13: memref<2x128x32xf32, #tpu.memory_space<vmem>>, %arg14: memref<2x1x32xf32, #tpu.memory_space<vmem>>, %arg15: memref<2x1x32xf32, #tpu.memory_space<vmem>>, %arg16: memref<2x1x32xf32, #tpu.memory_space<vmem>>, %arg17: memref<32x128xf32, #tpu.memory_space<vmem>>, %arg18: memref<1x128xf32, #tpu.memory_space<vmem>>, %arg19: memref<8x128xf32, #tpu.memory_space<vmem>>) attributes {dimension_semantics = [#tpu.dimension_semantics<parallel>], iteration_bounds = array<i64: 2>, scalar_prefetch = 0 : i64, scratch_operands = 0 : i64, tpu.core_type = #tpu.core_type<tc>, window_params = [{transform_indices = @transform_0, window_bounds = array<i64: 8, 32>}, {transform_indices = @transform_1, window_bounds = array<i64: 1, 1, 16>}, {pipeline_mode = #tpu.pipeline_mode<synchronous>, transform_indices = @transform_2, window_bounds = array<i64: 16, 32>}, {pipeline_mode = #tpu.pipeline_mode<synchronous>, transform_indices = @transform_3, window_bounds = array<i64: 1, 32>}, {pipeline_mode = #tpu.pipeline_mode<synchronous>, transform_indices = @transform_4, window_bounds = array<i64: 2, 12, 32, 8>}, {pipeline_mode = #tpu.pipeline_mode<synchronous>, transform_indices = @transform_5, window_bounds = array<i64: 2, 12, 1, 8>}, {pipeline_mode = #tpu.pipeline_mode<synchronous>, transform_indices = @transform_6, window_bounds = array<i64: 2, 4, 8, 32>}, {pipeline_mode = #tpu.pipeline_mode<synchronous>, transform_indices = @transform_7, window_bounds = array<i64: 2, 1, 32>}, {pipeline_mode = #tpu.pipeline_mode<synchronous>, transform_indices = @transform_8, window_bounds = array<i64: 2, 1, 32>}, {pipeline_mode = #tpu.pipeline_mode<synchronous>, transform_indices = @transform_9, window_bounds = array<i64: 2, 1, 32>}, {pipeline_mode = #tpu.pipeline_mode<synchronous>, transform_indices = @transform_10, window_bounds = array<i64: 2, 32, 128>}, {pipeline_mode = #tpu.pipeline_mode<synchronous>, transform_indices = @transform_11, window_bounds = array<i64: 2, 1, 128>}, {pipeline_mode = #tpu.pipeline_mode<synchronous>, transform_indices = @transform_12, window_bounds = array<i64: 2, 128, 32>}, {pipeline_mode = #tpu.pipeline_mode<synchronous>, transform_indices = @transform_13, window_bounds = array<i64: 2, 1, 32>}, {pipeline_mode = #tpu.pipeline_mode<synchronous>, transform_indices = @transform_14, window_bounds = array<i64: 2, 1, 32>}, {pipeline_mode = #tpu.pipeline_mode<synchronous>, transform_indices = @transform_15, window_bounds = array<i64: 2, 1, 32>}, {pipeline_mode = #tpu.pipeline_mode<synchronous>, transform_indices = @transform_16, window_bounds = array<i64: 32, 128>}, {pipeline_mode = #tpu.pipeline_mode<synchronous>, transform_indices = @transform_17, window_bounds = array<i64: 1, 128>}, {transform_indices = @transform_18, window_bounds = array<i64: 8, 128>}]} {
    %c0 = arith.constant 0 : index
    %c0_0 = arith.constant 0 : index
    %c0_1 = arith.constant 0 : index
    %0 = vector.load %arg2[%c0, %c0_0, %c0_1] : memref<1x1x16xf32, #tpu.memory_space<vmem>>, vector<1x1x16xf32>
    %1 = vector.shape_cast %0 : vector<1x1x16xf32> to vector<1x16xf32>
    %c0_2 = arith.constant 0 : index
    %c0_3 = arith.constant 0 : index
    %2 = vector.load %arg3[%c0_2, %c0_3] : memref<16x32xf32, #tpu.memory_space<vmem>>, vector<16x32xf32>
    %cst = arith.constant dense<0.000000e+00> : vector<1x32xf32>
    %3 = tpu.matmul %1, %2, %cst {dimension_numbers = #tpu.dot_dimension_numbers<[1], [0], [0], [1], [0, 0, 1, 1], [], []>} : vector<1x16xf32>, vector<16x32xf32>, vector<1x32xf32> -> vector<1x32xf32>
    %c0_4 = arith.constant 0 : index
    %c0_5 = arith.constant 0 : index
    %4 = vector.load %arg4[%c0_4, %c0_5] : memref<1x32xf32, #tpu.memory_space<vmem>>, vector<1x32xf32>
    %5 = arith.addf %3, %4 : vector<1x32xf32>
    %c0_6 = arith.constant 0 : index
    %c0_7 = arith.constant 0 : index
    %6 = vector.load %arg1[%c0_6, %c0_7] : memref<8x32xf32, #tpu.memory_space<vmem>>, vector<8x32xf32>
    %7 = vector.broadcast %5 : vector<1x32xf32> to vector<8x32xf32>
    %8 = arith.addf %6, %7 : vector<8x32xf32>
    %9 = tpu.iota {dimensions = array<i32: 0>} : vector<8x8xi32>
    %10 = tpu.iota {dimensions = array<i32: 1>} : vector<8x8xi32>
    %11 = arith.cmpi sgt, %10, %9 : vector<8x8xi32>
    %cst_8 = arith.constant 0xFF800000 : f32
    %cst_9 = arith.constant 0.000000e+00 : f32
    %12 = vector.broadcast %cst_8 : f32 to vector<8x8xf32>
    %13 = vector.broadcast %cst_9 : f32 to vector<8x8xf32>
    %14 = arith.select %11, %12, %13 : vector<8x8xi1>, vector<8x8xf32>
    %15 = vector.shape_cast %8 : vector<8x32xf32> to vector<1x8x32xf32>
    %16 = vector.shape_cast %15 : vector<1x8x32xf32> to vector<1x8x32xf32>
    %17 = vector.broadcast %16 : vector<1x8x32xf32> to vector<12x8x32xf32>
    %c0_10 = arith.constant 0 : index
    %c0_11 = arith.constant 0 : index
    %c0_12 = arith.constant 0 : index
    %c0_13 = arith.constant 0 : index
    %18 = vector.load %arg5[%c0_10, %c0_11, %c0_12, %c0_13] : memref<2x12x32x8xf32, #tpu.memory_space<vmem>>, vector<1x12x32x8xf32>
    %19 = vector.shape_cast %18 : vector<1x12x32x8xf32> to vector<12x32x8xf32>
    "tpu.trace_start"() <{level = 10 : i32, message = "gmd,gdk->gmk"}> : () -> ()
    %cst_14 = arith.constant dense<0.000000e+00> : vector<12x8x8xf32>
    %20 = tpu.matmul %17, %19, %cst_14 {dimension_numbers = #tpu.dot_dimension_numbers<[2], [1], [1], [2], [0, 0, 0, 1, 1, 2], [0], [0]>} : vector<12x8x32xf32>, vector<12x32x8xf32>, vector<12x8x8xf32> -> vector<12x8x8xf32>
    "tpu.trace_stop"() : () -> ()
    %c0_15 = arith.constant 0 : index
    %c0_16 = arith.constant 0 : index
    %c0_17 = arith.constant 0 : index
    %c0_18 = arith.constant 0 : index
    %21 = vector.load %arg6[%c0_15, %c0_16, %c0_17, %c0_18] : memref<2x12x1x8xf32, #tpu.memory_space<vmem>>, vector<1x12x1x8xf32>
    %22 = vector.shape_cast %21 : vector<1x12x1x8xf32> to vector<12x1x8xf32>
    %23 = vector.broadcast %22 : vector<12x1x8xf32> to vector<12x8x8xf32>
    %24 = arith.addf %20, %23 : vector<12x8x8xf32>
    %25 = vector.extract_strided_slice %24 {offsets = [0, 0, 0], sizes = [4, 8, 8], strides = [1, 1, 1]} : vector<12x8x8xf32> to vector<4x8x8xf32>
    %26 = vector.extract_strided_slice %24 {offsets = [4, 0, 0], sizes = [4, 8, 8], strides = [1, 1, 1]} : vector<12x8x8xf32> to vector<4x8x8xf32>
    %27 = vector.extract_strided_slice %24 {offsets = [8, 0, 0], sizes = [4, 8, 8], strides = [1, 1, 1]} : vector<12x8x8xf32> to vector<4x8x8xf32>
    "tpu.trace_start"() <{level = 10 : i32, message = "gqd,gkd->gqk"}> : () -> ()
    %cst_19 = arith.constant dense<0.000000e+00> : vector<4x8x8xf32>
    %28 = tpu.matmul %25, %26, %cst_19 {dimension_numbers = #tpu.dot_dimension_numbers<[2], [2], [1], [1], [0, 0, 0, 1, 1, 1], [0], [0]>} : vector<4x8x8xf32>, vector<4x8x8xf32>, vector<4x8x8xf32> -> vector<4x8x8xf32>
    "tpu.trace_stop"() : () -> ()
    %29 = vector.shape_cast %14 : vector<8x8xf32> to vector<1x8x8xf32>
    %30 = vector.broadcast %29 : vector<1x8x8xf32> to vector<4x8x8xf32>
    %31 = arith.addf %28, %30 : vector<4x8x8xf32>
    %cst_20 = arith.constant dense<0xFF800000> : vector<4x8xf32>
    %32 = vector.multi_reduction <maximumf>, %31, %cst_20 [2] : vector<4x8x8xf32> to vector<4x8xf32>
    %33 = vector.shape_cast %32 : vector<4x8xf32> to vector<4x8x1xf32>
    %34 = vector.broadcast %33 : vector<4x8x1xf32> to vector<4x8x8xf32>
    %35 = arith.subf %31, %34 : vector<4x8x8xf32>
    %36 = math.exp %35 : vector<4x8x8xf32>
    %cst_21 = arith.constant dense<0.000000e+00> : vector<4x8xf32>
    %37 = vector.multi_reduction <add>, %36, %cst_21 [2] : vector<4x8x8xf32> to vector<4x8xf32>
    %38 = vector.shape_cast %37 : vector<4x8xf32> to vector<4x8x1xf32>
    %39 = tpu.reciprocal %38 : vector<4x8x1xf32> -> vector<4x8x1xf32>
    %40 = vector.broadcast %39 : vector<4x8x1xf32> to vector<4x8x8xf32>
    %41 = arith.mulf %36, %40 : vector<4x8x8xf32>
    "tpu.trace_start"() <{level = 10 : i32, message = "gqk,gkd->gqd"}> : () -> ()
    %cst_22 = arith.constant dense<0.000000e+00> : vector<4x8x8xf32>
    %42 = tpu.matmul %41, %27, %cst_22 {dimension_numbers = #tpu.dot_dimension_numbers<[2], [1], [1], [2], [0, 0, 0, 1, 1, 2], [0], [0]>} : vector<4x8x8xf32>, vector<4x8x8xf32>, vector<4x8x8xf32> -> vector<4x8x8xf32>
    "tpu.trace_stop"() : () -> ()
    %c0_23 = arith.constant 0 : index
    %c0_24 = arith.constant 0 : index
    %c0_25 = arith.constant 0 : index
    %c0_26 = arith.constant 0 : index
    %43 = vector.load %arg7[%c0_23, %c0_24, %c0_25, %c0_26] : memref<2x4x8x32xf32, #tpu.memory_space<vmem>>, vector<1x4x8x32xf32>
    %44 = vector.shape_cast %43 : vector<1x4x8x32xf32> to vector<4x8x32xf32>
    "tpu.trace_start"() <{level = 10 : i32, message = "gsf,gfd->gsd"}> : () -> ()
    %cst_27 = arith.constant dense<0.000000e+00> : vector<4x8x32xf32>
    %45 = tpu.matmul %42, %44, %cst_27 {dimension_numbers = #tpu.dot_dimension_numbers<[2], [1], [1], [2], [0, 0, 0, 1, 1, 2], [0], [0]>} : vector<4x8x8xf32>, vector<4x8x32xf32>, vector<4x8x32xf32> -> vector<4x8x32xf32>
    "tpu.trace_stop"() : () -> ()
    %cst_28 = arith.constant dense<0.000000e+00> : vector<8x32xf32>
    %46 = vector.multi_reduction <add>, %45, %cst_28 [0] : vector<4x8x32xf32> to vector<8x32xf32>
    %c0_29 = arith.constant 0 : index
    %c0_30 = arith.constant 0 : index
    %c0_31 = arith.constant 0 : index
    %47 = vector.load %arg8[%c0_29, %c0_30, %c0_31] : memref<2x1x32xf32, #tpu.memory_space<vmem>>, vector<1x1x32xf32>
    %48 = vector.shape_cast %47 : vector<1x1x32xf32> to vector<1x32xf32>
    %49 = vector.broadcast %48 : vector<1x32xf32> to vector<8x32xf32>
    %50 = arith.addf %46, %49 : vector<8x32xf32>
    %51 = arith.addf %8, %50 : vector<8x32xf32>
    %cst_32 = arith.constant dense<0.000000e+00> : vector<8xf32>
    %52 = vector.multi_reduction <add>, %51, %cst_32 [1] : vector<8x32xf32> to vector<8xf32>
    %53 = vector.shape_cast %52 : vector<8xf32> to vector<8x1xf32>
    %cst_33 = arith.constant 3.200000e+01 : f32
    %54 = vector.broadcast %cst_33 : f32 to vector<8x1xf32>
    %55 = arith.divf %53, %54 : vector<8x1xf32>
    %56 = vector.broadcast %55 : vector<8x1xf32> to vector<8x32xf32>
    %57 = arith.subf %51, %56 : vector<8x32xf32>
    %58 = arith.mulf %57, %57 : vector<8x32xf32>
    %cst_34 = arith.constant dense<0.000000e+00> : vector<8xf32>
    %59 = vector.multi_reduction <add>, %58, %cst_34 [1] : vector<8x32xf32> to vector<8xf32>
    %60 = vector.shape_cast %59 : vector<8xf32> to vector<8x1xf32>
    %cst_35 = arith.constant 3.200000e+01 : f32
    %61 = vector.broadcast %cst_35 : f32 to vector<8x1xf32>
    %62 = arith.divf %60, %61 : vector<8x1xf32>
    %63 = vector.broadcast %55 : vector<8x1xf32> to vector<8x32xf32>
    %64 = arith.subf %51, %63 : vector<8x32xf32>
    %cst_36 = arith.constant 9.99999974E-6 : f32
    %65 = vector.broadcast %cst_36 : f32 to vector<8x1xf32>
    %66 = arith.addf %62, %65 : vector<8x1xf32>
    %67 = math.rsqrt %66 : vector<8x1xf32>
    %68 = vector.broadcast %67 : vector<8x1xf32> to vector<8x32xf32>
    %69 = arith.mulf %64, %68 : vector<8x32xf32>
    %c0_37 = arith.constant 0 : index
    %c0_38 = arith.constant 0 : index
    %c0_39 = arith.constant 0 : index
    %70 = vector.load %arg9[%c0_37, %c0_38, %c0_39] : memref<2x1x32xf32, #tpu.memory_space<vmem>>, vector<1x1x32xf32>
    %71 = vector.shape_cast %70 : vector<1x1x32xf32> to vector<1x32xf32>
    %72 = vector.broadcast %71 : vector<1x32xf32> to vector<8x32xf32>
    %73 = arith.mulf %69, %72 : vector<8x32xf32>
    %c0_40 = arith.constant 0 : index
    %c0_41 = arith.constant 0 : index
    %c0_42 = arith.constant 0 : index
    %74 = vector.load %arg10[%c0_40, %c0_41, %c0_42] : memref<2x1x32xf32, #tpu.memory_space<vmem>>, vector<1x1x32xf32>
    %75 = vector.shape_cast %74 : vector<1x1x32xf32> to vector<1x32xf32>
    %76 = vector.broadcast %75 : vector<1x32xf32> to vector<8x32xf32>
    %77 = arith.addf %73, %76 : vector<8x32xf32>
    %c0_43 = arith.constant 0 : index
    %c0_44 = arith.constant 0 : index
    %c0_45 = arith.constant 0 : index
    %78 = vector.load %arg11[%c0_43, %c0_44, %c0_45] : memref<2x32x128xf32, #tpu.memory_space<vmem>>, vector<1x32x128xf32>
    %79 = vector.shape_cast %78 : vector<1x32x128xf32> to vector<32x128xf32>
    %cst_46 = arith.constant dense<0.000000e+00> : vector<8x128xf32>
    %80 = tpu.matmul %77, %79, %cst_46 {dimension_numbers = #tpu.dot_dimension_numbers<[1], [0], [0], [1], [0, 0, 1, 1], [], []>} : vector<8x32xf32>, vector<32x128xf32>, vector<8x128xf32> -> vector<8x128xf32>
    %c0_47 = arith.constant 0 : index
    %c0_48 = arith.constant 0 : index
    %c0_49 = arith.constant 0 : index
    %81 = vector.load %arg12[%c0_47, %c0_48, %c0_49] : memref<2x1x128xf32, #tpu.memory_space<vmem>>, vector<1x1x128xf32>
    %82 = vector.shape_cast %81 : vector<1x1x128xf32> to vector<1x128xf32>
    %83 = vector.broadcast %82 : vector<1x128xf32> to vector<8x128xf32>
    %84 = arith.addf %80, %83 : vector<8x128xf32>
    %cst_50 = arith.constant 0.000000e+00 : f32
    %85 = vector.broadcast %cst_50 : f32 to vector<8x128xf32>
    %86 = arith.maximumf %84, %85 : vector<8x128xf32>
    %c0_51 = arith.constant 0 : index
    %c0_52 = arith.constant 0 : index
    %c0_53 = arith.constant 0 : index
    %87 = vector.load %arg13[%c0_51, %c0_52, %c0_53] : memref<2x128x32xf32, #tpu.memory_space<vmem>>, vector<1x128x32xf32>
    %88 = vector.shape_cast %87 : vector<1x128x32xf32> to vector<128x32xf32>
    %cst_54 = arith.constant dense<0.000000e+00> : vector<8x32xf32>
    %89 = tpu.matmul %86, %88, %cst_54 {dimension_numbers = #tpu.dot_dimension_numbers<[1], [0], [0], [1], [0, 0, 1, 1], [], []>} : vector<8x128xf32>, vector<128x32xf32>, vector<8x32xf32> -> vector<8x32xf32>
    %c0_55 = arith.constant 0 : index
    %c0_56 = arith.constant 0 : index
    %c0_57 = arith.constant 0 : index
    %90 = vector.load %arg14[%c0_55, %c0_56, %c0_57] : memref<2x1x32xf32, #tpu.memory_space<vmem>>, vector<1x1x32xf32>
    %91 = vector.shape_cast %90 : vector<1x1x32xf32> to vector<1x32xf32>
    %92 = vector.broadcast %91 : vector<1x32xf32> to vector<8x32xf32>
    %93 = arith.addf %89, %92 : vector<8x32xf32>
    %94 = arith.addf %77, %93 : vector<8x32xf32>
    %cst_58 = arith.constant dense<0.000000e+00> : vector<8xf32>
    %95 = vector.multi_reduction <add>, %94, %cst_58 [1] : vector<8x32xf32> to vector<8xf32>
    %96 = vector.shape_cast %95 : vector<8xf32> to vector<8x1xf32>
    %cst_59 = arith.constant 3.200000e+01 : f32
    %97 = vector.broadcast %cst_59 : f32 to vector<8x1xf32>
    %98 = arith.divf %96, %97 : vector<8x1xf32>
    %99 = vector.broadcast %98 : vector<8x1xf32> to vector<8x32xf32>
    %100 = arith.subf %94, %99 : vector<8x32xf32>
    %101 = arith.mulf %100, %100 : vector<8x32xf32>
    %cst_60 = arith.constant dense<0.000000e+00> : vector<8xf32>
    %102 = vector.multi_reduction <add>, %101, %cst_60 [1] : vector<8x32xf32> to vector<8xf32>
    %103 = vector.shape_cast %102 : vector<8xf32> to vector<8x1xf32>
    %cst_61 = arith.constant 3.200000e+01 : f32
    %104 = vector.broadcast %cst_61 : f32 to vector<8x1xf32>
    %105 = arith.divf %103, %104 : vector<8x1xf32>
    %106 = vector.broadcast %98 : vector<8x1xf32> to vector<8x32xf32>
    %107 = arith.subf %94, %106 : vector<8x32xf32>
    %cst_62 = arith.constant 9.99999974E-6 : f32
    %108 = vector.broadcast %cst_62 : f32 to vector<8x1xf32>
    %109 = arith.addf %105, %108 : vector<8x1xf32>
    %110 = math.rsqrt %109 : vector<8x1xf32>
    %111 = vector.broadcast %110 : vector<8x1xf32> to vector<8x32xf32>
    %112 = arith.mulf %107, %111 : vector<8x32xf32>
    %c0_63 = arith.constant 0 : index
    %c0_64 = arith.constant 0 : index
    %c0_65 = arith.constant 0 : index
    %113 = vector.load %arg15[%c0_63, %c0_64, %c0_65] : memref<2x1x32xf32, #tpu.memory_space<vmem>>, vector<1x1x32xf32>
    %114 = vector.shape_cast %113 : vector<1x1x32xf32> to vector<1x32xf32>
    %115 = vector.broadcast %114 : vector<1x32xf32> to vector<8x32xf32>
    %116 = arith.mulf %112, %115 : vector<8x32xf32>
    %c0_66 = arith.constant 0 : index
    %c0_67 = arith.constant 0 : index
    %c0_68 = arith.constant 0 : index
    %117 = vector.load %arg16[%c0_66, %c0_67, %c0_68] : memref<2x1x32xf32, #tpu.memory_space<vmem>>, vector<1x1x32xf32>
    %118 = vector.shape_cast %117 : vector<1x1x32xf32> to vector<1x32xf32>
    %119 = vector.broadcast %118 : vector<1x32xf32> to vector<8x32xf32>
    %120 = arith.addf %116, %119 : vector<8x32xf32>
    %121 = vector.shape_cast %120 : vector<8x32xf32> to vector<1x8x32xf32>
    %122 = vector.shape_cast %121 : vector<1x8x32xf32> to vector<1x8x32xf32>
    %123 = vector.broadcast %122 : vector<1x8x32xf32> to vector<12x8x32xf32>
    %c1 = arith.constant 1 : index
    %c0_69 = arith.constant 0 : index
    %c0_70 = arith.constant 0 : index
    %c0_71 = arith.constant 0 : index
    %124 = vector.load %arg5[%c1, %c0_69, %c0_70, %c0_71] : memref<2x12x32x8xf32, #tpu.memory_space<vmem>>, vector<1x12x32x8xf32>
    %125 = vector.shape_cast %124 : vector<1x12x32x8xf32> to vector<12x32x8xf32>
    "tpu.trace_start"() <{level = 10 : i32, message = "gmd,gdk->gmk"}> : () -> ()
    %cst_72 = arith.constant dense<0.000000e+00> : vector<12x8x8xf32>
    %126 = tpu.matmul %123, %125, %cst_72 {dimension_numbers = #tpu.dot_dimension_numbers<[2], [1], [1], [2], [0, 0, 0, 1, 1, 2], [0], [0]>} : vector<12x8x32xf32>, vector<12x32x8xf32>, vector<12x8x8xf32> -> vector<12x8x8xf32>
    "tpu.trace_stop"() : () -> ()
    %c1_73 = arith.constant 1 : index
    %c0_74 = arith.constant 0 : index
    %c0_75 = arith.constant 0 : index
    %c0_76 = arith.constant 0 : index
    %127 = vector.load %arg6[%c1_73, %c0_74, %c0_75, %c0_76] : memref<2x12x1x8xf32, #tpu.memory_space<vmem>>, vector<1x12x1x8xf32>
    %128 = vector.shape_cast %127 : vector<1x12x1x8xf32> to vector<12x1x8xf32>
    %129 = vector.broadcast %128 : vector<12x1x8xf32> to vector<12x8x8xf32>
    %130 = arith.addf %126, %129 : vector<12x8x8xf32>
    %131 = vector.extract_strided_slice %130 {offsets = [0, 0, 0], sizes = [4, 8, 8], strides = [1, 1, 1]} : vector<12x8x8xf32> to vector<4x8x8xf32>
    %132 = vector.extract_strided_slice %130 {offsets = [4, 0, 0], sizes = [4, 8, 8], strides = [1, 1, 1]} : vector<12x8x8xf32> to vector<4x8x8xf32>
    %133 = vector.extract_strided_slice %130 {offsets = [8, 0, 0], sizes = [4, 8, 8], strides = [1, 1, 1]} : vector<12x8x8xf32> to vector<4x8x8xf32>
    "tpu.trace_start"() <{level = 10 : i32, message = "gqd,gkd->gqk"}> : () -> ()
    %cst_77 = arith.constant dense<0.000000e+00> : vector<4x8x8xf32>
    %134 = tpu.matmul %131, %132, %cst_77 {dimension_numbers = #tpu.dot_dimension_numbers<[2], [2], [1], [1], [0, 0, 0, 1, 1, 1], [0], [0]>} : vector<4x8x8xf32>, vector<4x8x8xf32>, vector<4x8x8xf32> -> vector<4x8x8xf32>
    "tpu.trace_stop"() : () -> ()
    %135 = vector.shape_cast %14 : vector<8x8xf32> to vector<1x8x8xf32>
    %136 = vector.broadcast %135 : vector<1x8x8xf32> to vector<4x8x8xf32>
    %137 = arith.addf %134, %136 : vector<4x8x8xf32>
    %cst_78 = arith.constant dense<0xFF800000> : vector<4x8xf32>
    %138 = vector.multi_reduction <maximumf>, %137, %cst_78 [2] : vector<4x8x8xf32> to vector<4x8xf32>
    %139 = vector.shape_cast %138 : vector<4x8xf32> to vector<4x8x1xf32>
    %140 = vector.broadcast %139 : vector<4x8x1xf32> to vector<4x8x8xf32>
    %141 = arith.subf %137, %140 : vector<4x8x8xf32>
    %142 = math.exp %141 : vector<4x8x8xf32>
    %cst_79 = arith.constant dense<0.000000e+00> : vector<4x8xf32>
    %143 = vector.multi_reduction <add>, %142, %cst_79 [2] : vector<4x8x8xf32> to vector<4x8xf32>
    %144 = vector.shape_cast %143 : vector<4x8xf32> to vector<4x8x1xf32>
    %145 = tpu.reciprocal %144 : vector<4x8x1xf32> -> vector<4x8x1xf32>
    %146 = vector.broadcast %145 : vector<4x8x1xf32> to vector<4x8x8xf32>
    %147 = arith.mulf %142, %146 : vector<4x8x8xf32>
    "tpu.trace_start"() <{level = 10 : i32, message = "gqk,gkd->gqd"}> : () -> ()
    %cst_80 = arith.constant dense<0.000000e+00> : vector<4x8x8xf32>
    %148 = tpu.matmul %147, %133, %cst_80 {dimension_numbers = #tpu.dot_dimension_numbers<[2], [1], [1], [2], [0, 0, 0, 1, 1, 2], [0], [0]>} : vector<4x8x8xf32>, vector<4x8x8xf32>, vector<4x8x8xf32> -> vector<4x8x8xf32>
    "tpu.trace_stop"() : () -> ()
    %c1_81 = arith.constant 1 : index
    %c0_82 = arith.constant 0 : index
    %c0_83 = arith.constant 0 : index
    %c0_84 = arith.constant 0 : index
    %149 = vector.load %arg7[%c1_81, %c0_82, %c0_83, %c0_84] : memref<2x4x8x32xf32, #tpu.memory_space<vmem>>, vector<1x4x8x32xf32>
    %150 = vector.shape_cast %149 : vector<1x4x8x32xf32> to vector<4x8x32xf32>
    "tpu.trace_start"() <{level = 10 : i32, message = "gsf,gfd->gsd"}> : () -> ()
    %cst_85 = arith.constant dense<0.000000e+00> : vector<4x8x32xf32>
    %151 = tpu.matmul %148, %150, %cst_85 {dimension_numbers = #tpu.dot_dimension_numbers<[2], [1], [1], [2], [0, 0, 0, 1, 1, 2], [0], [0]>} : vector<4x8x8xf32>, vector<4x8x32xf32>, vector<4x8x32xf32> -> vector<4x8x32xf32>
    "tpu.trace_stop"() : () -> ()
    %cst_86 = arith.constant dense<0.000000e+00> : vector<8x32xf32>
    %152 = vector.multi_reduction <add>, %151, %cst_86 [0] : vector<4x8x32xf32> to vector<8x32xf32>
    %c1_87 = arith.constant 1 : index
    %c0_88 = arith.constant 0 : index
    %c0_89 = arith.constant 0 : index
    %153 = vector.load %arg8[%c1_87, %c0_88, %c0_89] : memref<2x1x32xf32, #tpu.memory_space<vmem>>, vector<1x1x32xf32>
    %154 = vector.shape_cast %153 : vector<1x1x32xf32> to vector<1x32xf32>
    %155 = vector.broadcast %154 : vector<1x32xf32> to vector<8x32xf32>
    %156 = arith.addf %152, %155 : vector<8x32xf32>
    %157 = arith.addf %120, %156 : vector<8x32xf32>
    %cst_90 = arith.constant dense<0.000000e+00> : vector<8xf32>
    %158 = vector.multi_reduction <add>, %157, %cst_90 [1] : vector<8x32xf32> to vector<8xf32>
    %159 = vector.shape_cast %158 : vector<8xf32> to vector<8x1xf32>
    %cst_91 = arith.constant 3.200000e+01 : f32
    %160 = vector.broadcast %cst_91 : f32 to vector<8x1xf32>
    %161 = arith.divf %159, %160 : vector<8x1xf32>
    %162 = vector.broadcast %161 : vector<8x1xf32> to vector<8x32xf32>
    %163 = arith.subf %157, %162 : vector<8x32xf32>
    %164 = arith.mulf %163, %163 : vector<8x32xf32>
    %cst_92 = arith.constant dense<0.000000e+00> : vector<8xf32>
    %165 = vector.multi_reduction <add>, %164, %cst_92 [1] : vector<8x32xf32> to vector<8xf32>
    %166 = vector.shape_cast %165 : vector<8xf32> to vector<8x1xf32>
    %cst_93 = arith.constant 3.200000e+01 : f32
    %167 = vector.broadcast %cst_93 : f32 to vector<8x1xf32>
    %168 = arith.divf %166, %167 : vector<8x1xf32>
    %169 = vector.broadcast %161 : vector<8x1xf32> to vector<8x32xf32>
    %170 = arith.subf %157, %169 : vector<8x32xf32>
    %cst_94 = arith.constant 9.99999974E-6 : f32
    %171 = vector.broadcast %cst_94 : f32 to vector<8x1xf32>
    %172 = arith.addf %168, %171 : vector<8x1xf32>
    %173 = math.rsqrt %172 : vector<8x1xf32>
    %174 = vector.broadcast %173 : vector<8x1xf32> to vector<8x32xf32>
    %175 = arith.mulf %170, %174 : vector<8x32xf32>
    %c1_95 = arith.constant 1 : index
    %c0_96 = arith.constant 0 : index
    %c0_97 = arith.constant 0 : index
    %176 = vector.load %arg9[%c1_95, %c0_96, %c0_97] : memref<2x1x32xf32, #tpu.memory_space<vmem>>, vector<1x1x32xf32>
    %177 = vector.shape_cast %176 : vector<1x1x32xf32> to vector<1x32xf32>
    %178 = vector.broadcast %177 : vector<1x32xf32> to vector<8x32xf32>
    %179 = arith.mulf %175, %178 : vector<8x32xf32>
    %c1_98 = arith.constant 1 : index
    %c0_99 = arith.constant 0 : index
    %c0_100 = arith.constant 0 : index
    %180 = vector.load %arg10[%c1_98, %c0_99, %c0_100] : memref<2x1x32xf32, #tpu.memory_space<vmem>>, vector<1x1x32xf32>
    %181 = vector.shape_cast %180 : vector<1x1x32xf32> to vector<1x32xf32>
    %182 = vector.broadcast %181 : vector<1x32xf32> to vector<8x32xf32>
    %183 = arith.addf %179, %182 : vector<8x32xf32>
    %c1_101 = arith.constant 1 : index
    %c0_102 = arith.constant 0 : index
    %c0_103 = arith.constant 0 : index
    %184 = vector.load %arg11[%c1_101, %c0_102, %c0_103] : memref<2x32x128xf32, #tpu.memory_space<vmem>>, vector<1x32x128xf32>
    %185 = vector.shape_cast %184 : vector<1x32x128xf32> to vector<32x128xf32>
    %cst_104 = arith.constant dense<0.000000e+00> : vector<8x128xf32>
    %186 = tpu.matmul %183, %185, %cst_104 {dimension_numbers = #tpu.dot_dimension_numbers<[1], [0], [0], [1], [0, 0, 1, 1], [], []>} : vector<8x32xf32>, vector<32x128xf32>, vector<8x128xf32> -> vector<8x128xf32>
    %c1_105 = arith.constant 1 : index
    %c0_106 = arith.constant 0 : index
    %c0_107 = arith.constant 0 : index
    %187 = vector.load %arg12[%c1_105, %c0_106, %c0_107] : memref<2x1x128xf32, #tpu.memory_space<vmem>>, vector<1x1x128xf32>
    %188 = vector.shape_cast %187 : vector<1x1x128xf32> to vector<1x128xf32>
    %189 = vector.broadcast %188 : vector<1x128xf32> to vector<8x128xf32>
    %190 = arith.addf %186, %189 : vector<8x128xf32>
    %cst_108 = arith.constant 0.000000e+00 : f32
    %191 = vector.broadcast %cst_108 : f32 to vector<8x128xf32>
    %192 = arith.maximumf %190, %191 : vector<8x128xf32>
    %c1_109 = arith.constant 1 : index
    %c0_110 = arith.constant 0 : index
    %c0_111 = arith.constant 0 : index
    %193 = vector.load %arg13[%c1_109, %c0_110, %c0_111] : memref<2x128x32xf32, #tpu.memory_space<vmem>>, vector<1x128x32xf32>
    %194 = vector.shape_cast %193 : vector<1x128x32xf32> to vector<128x32xf32>
    %cst_112 = arith.constant dense<0.000000e+00> : vector<8x32xf32>
    %195 = tpu.matmul %192, %194, %cst_112 {dimension_numbers = #tpu.dot_dimension_numbers<[1], [0], [0], [1], [0, 0, 1, 1], [], []>} : vector<8x128xf32>, vector<128x32xf32>, vector<8x32xf32> -> vector<8x32xf32>
    %c1_113 = arith.constant 1 : index
    %c0_114 = arith.constant 0 : index
    %c0_115 = arith.constant 0 : index
    %196 = vector.load %arg14[%c1_113, %c0_114, %c0_115] : memref<2x1x32xf32, #tpu.memory_space<vmem>>, vector<1x1x32xf32>
    %197 = vector.shape_cast %196 : vector<1x1x32xf32> to vector<1x32xf32>
    %198 = vector.broadcast %197 : vector<1x32xf32> to vector<8x32xf32>
    %199 = arith.addf %195, %198 : vector<8x32xf32>
    %200 = arith.addf %183, %199 : vector<8x32xf32>
    %cst_116 = arith.constant dense<0.000000e+00> : vector<8xf32>
    %201 = vector.multi_reduction <add>, %200, %cst_116 [1] : vector<8x32xf32> to vector<8xf32>
    %202 = vector.shape_cast %201 : vector<8xf32> to vector<8x1xf32>
    %cst_117 = arith.constant 3.200000e+01 : f32
    %203 = vector.broadcast %cst_117 : f32 to vector<8x1xf32>
    %204 = arith.divf %202, %203 : vector<8x1xf32>
    %205 = vector.broadcast %204 : vector<8x1xf32> to vector<8x32xf32>
    %206 = arith.subf %200, %205 : vector<8x32xf32>
    %207 = arith.mulf %206, %206 : vector<8x32xf32>
    %cst_118 = arith.constant dense<0.000000e+00> : vector<8xf32>
    %208 = vector.multi_reduction <add>, %207, %cst_118 [1] : vector<8x32xf32> to vector<8xf32>
    %209 = vector.shape_cast %208 : vector<8xf32> to vector<8x1xf32>
    %cst_119 = arith.constant 3.200000e+01 : f32
    %210 = vector.broadcast %cst_119 : f32 to vector<8x1xf32>
    %211 = arith.divf %209, %210 : vector<8x1xf32>
    %212 = vector.broadcast %204 : vector<8x1xf32> to vector<8x32xf32>
    %213 = arith.subf %200, %212 : vector<8x32xf32>
    %cst_120 = arith.constant 9.99999974E-6 : f32
    %214 = vector.broadcast %cst_120 : f32 to vector<8x1xf32>
    %215 = arith.addf %211, %214 : vector<8x1xf32>
    %216 = math.rsqrt %215 : vector<8x1xf32>
    %217 = vector.broadcast %216 : vector<8x1xf32> to vector<8x32xf32>
    %218 = arith.mulf %213, %217 : vector<8x32xf32>
    %c1_121 = arith.constant 1 : index
    %c0_122 = arith.constant 0 : index
    %c0_123 = arith.constant 0 : index
    %219 = vector.load %arg15[%c1_121, %c0_122, %c0_123] : memref<2x1x32xf32, #tpu.memory_space<vmem>>, vector<1x1x32xf32>
    %220 = vector.shape_cast %219 : vector<1x1x32xf32> to vector<1x32xf32>
    %221 = vector.broadcast %220 : vector<1x32xf32> to vector<8x32xf32>
    %222 = arith.mulf %218, %221 : vector<8x32xf32>
    %c1_124 = arith.constant 1 : index
    %c0_125 = arith.constant 0 : index
    %c0_126 = arith.constant 0 : index
    %223 = vector.load %arg16[%c1_124, %c0_125, %c0_126] : memref<2x1x32xf32, #tpu.memory_space<vmem>>, vector<1x1x32xf32>
    %224 = vector.shape_cast %223 : vector<1x1x32xf32> to vector<1x32xf32>
    %225 = vector.broadcast %224 : vector<1x32xf32> to vector<8x32xf32>
    %226 = arith.addf %222, %225 : vector<8x32xf32>
    %c0_127 = arith.constant 0 : index
    %c0_128 = arith.constant 0 : index
    %227 = vector.load %arg17[%c0_127, %c0_128] : memref<32x128xf32, #tpu.memory_space<vmem>>, vector<32x128xf32>
    %cst_129 = arith.constant dense<0.000000e+00> : vector<8x128xf32>
    %228 = tpu.matmul %226, %227, %cst_129 {dimension_numbers = #tpu.dot_dimension_numbers<[1], [0], [0], [1], [0, 0, 1, 1], [], []>} : vector<8x32xf32>, vector<32x128xf32>, vector<8x128xf32> -> vector<8x128xf32>
    %c0_130 = arith.constant 0 : index
    %c0_131 = arith.constant 0 : index
    %229 = vector.load %arg18[%c0_130, %c0_131] : memref<1x128xf32, #tpu.memory_space<vmem>>, vector<1x128xf32>
    %230 = vector.broadcast %229 : vector<1x128xf32> to vector<8x128xf32>
    %231 = arith.addf %228, %230 : vector<8x128xf32>
    %c0_132 = arith.constant 0 : index
    %c0_133 = arith.constant 0 : index
    %232 = vector.load %arg19[%c0_132, %c0_133] : memref<8x128xf32, #tpu.memory_space<vmem>>, vector<8x128xf32>
    tpu.vector_store %arg19[%c0_132, %c0_133], %231 {strides = array<i32>} : memref<8x128xf32, #tpu.memory_space<vmem>>, vector<8x128xf32>,
    return
  }
  func.func @transform_0(%arg0: i32) -> (i32, i32) {
    %c0_i32 = arith.constant 0 : i32
    %c0_i32_0 = arith.constant 0 : i32
    return %arg0, %c0_i32 : i32, i32
  }
  func.func @transform_1(%arg0: i32) -> (i32, i32, i32) {
    %c0_i32 = arith.constant 0 : i32
    %c0_i32_0 = arith.constant 0 : i32
    %c0_i32_1 = arith.constant 0 : i32
    return %arg0, %c0_i32, %c0_i32_0 : i32, i32, i32
  }
  func.func @transform_2(%arg0: i32) -> (i32, i32) {
    %c0_i32 = arith.constant 0 : i32
    %c0_i32_0 = arith.constant 0 : i32
    %c0_i32_1 = arith.constant 0 : i32
    return %c0_i32, %c0_i32_0 : i32, i32
  }
  func.func @transform_3(%arg0: i32) -> (i32, i32) {
    %c0_i32 = arith.constant 0 : i32
    %c0_i32_0 = arith.constant 0 : i32
    %c0_i32_1 = arith.constant 0 : i32
    return %c0_i32, %c0_i32_0 : i32, i32
  }
  func.func @transform_4(%arg0: i32) -> (i32, i32, i32, i32) {
    %c0_i32 = arith.constant 0 : i32
    %c0_i32_0 = arith.constant 0 : i32
    %c0_i32_1 = arith.constant 0 : i32
    %c0_i32_2 = arith.constant 0 : i32
    %c0_i32_3 = arith.constant 0 : i32
    return %c0_i32, %c0_i32_0, %c0_i32_1, %c0_i32_2 : i32, i32, i32, i32
  }
  func.func @transform_5(%arg0: i32) -> (i32, i32, i32, i32) {
    %c0_i32 = arith.constant 0 : i32
    %c0_i32_0 = arith.constant 0 : i32
    %c0_i32_1 = arith.constant 0 : i32
    %c0_i32_2 = arith.constant 0 : i32
    %c0_i32_3 = arith.constant 0 : i32
    return %c0_i32, %c0_i32_0, %c0_i32_1, %c0_i32_2 : i32, i32, i32, i32
  }
  func.func @transform_6(%arg0: i32) -> (i32, i32, i32, i32) {
    %c0_i32 = arith.constant 0 : i32
    %c0_i32_0 = arith.constant 0 : i32
    %c0_i32_1 = arith.constant 0 : i32
    %c0_i32_2 = arith.constant 0 : i32
    %c0_i32_3 = arith.constant 0 : i32
    return %c0_i32, %c0_i32_0, %c0_i32_1, %c0_i32_2 : i32, i32, i32, i32
  }
  func.func @transform_7(%arg0: i32) -> (i32, i32, i32) {
    %c0_i32 = arith.constant 0 : i32
    %c0_i32_0 = arith.constant 0 : i32
    %c0_i32_1 = arith.constant 0 : i32
    %c0_i32_2 = arith.constant 0 : i32
    return %c0_i32, %c0_i32_0, %c0_i32_1 : i32, i32, i32
  }
  func.func @transform_8(%arg0: i32) -> (i32, i32, i32) {
    %c0_i32 = arith.constant 0 : i32
    %c0_i32_0 = arith.constant 0 : i32
    %c0_i32_1 = arith.constant 0 : i32
    %c0_i32_2 = arith.constant 0 : i32
    return %c0_i32, %c0_i32_0, %c0_i32_1 : i32, i32, i32
  }
  func.func @transform_9(%arg0: i32) -> (i32, i32, i32) {
    %c0_i32 = arith.constant 0 : i32
    %c0_i32_0 = arith.constant 0 : i32
    %c0_i32_1 = arith.constant 0 : i32
    %c0_i32_2 = arith.constant 0 : i32
    return %c0_i32, %c0_i32_0, %c0_i32_1 : i32, i32, i32
  }
  func.func @transform_10(%arg0: i32) -> (i32, i32, i32) {
    %c0_i32 = arith.constant 0 : i32
    %c0_i32_0 = arith.constant 0 : i32
    %c0_i32_1 = arith.constant 0 : i32
    %c0_i32_2 = arith.constant 0 : i32
    return %c0_i32, %c0_i32_0, %c0_i32_1 : i32, i32, i32
  }
  func.func @transform_11(%arg0: i32) -> (i32, i32, i32) {
    %c0_i32 = arith.constant 0 : i32
    %c0_i32_0 = arith.constant 0 : i32
    %c0_i32_1 = arith.constant 0 : i32
    %c0_i32_2 = arith.constant 0 : i32
    return %c0_i32, %c0_i32_0, %c0_i32_1 : i32, i32, i32
  }
  func.func @transform_12(%arg0: i32) -> (i32, i32, i32) {
    %c0_i32 = arith.constant 0 : i32
    %c0_i32_0 = arith.constant 0 : i32
    %c0_i32_1 = arith.constant 0 : i32
    %c0_i32_2 = arith.constant 0 : i32
    return %c0_i32, %c0_i32_0, %c0_i32_1 : i32, i32, i32
  }
  func.func @transform_13(%arg0: i32) -> (i32, i32, i32) {
    %c0_i32 = arith.constant 0 : i32
    %c0_i32_0 = arith.constant 0 : i32
    %c0_i32_1 = arith.constant 0 : i32
    %c0_i32_2 = arith.constant 0 : i32
    return %c0_i32, %c0_i32_0, %c0_i32_1 : i32, i32, i32
  }
  func.func @transform_14(%arg0: i32) -> (i32, i32, i32) {
    %c0_i32 = arith.constant 0 : i32
    %c0_i32_0 = arith.constant 0 : i32
    %c0_i32_1 = arith.constant 0 : i32
    %c0_i32_2 = arith.constant 0 : i32
    return %c0_i32, %c0_i32_0, %c0_i32_1 : i32, i32, i32
  }
  func.func @transform_15(%arg0: i32) -> (i32, i32, i32) {
    %c0_i32 = arith.constant 0 : i32
    %c0_i32_0 = arith.constant 0 : i32
    %c0_i32_1 = arith.constant 0 : i32
    %c0_i32_2 = arith.constant 0 : i32
    return %c0_i32, %c0_i32_0, %c0_i32_1 : i32, i32, i32
  }
  func.func @transform_16(%arg0: i32) -> (i32, i32) {
    %c0_i32 = arith.constant 0 : i32
    %c0_i32_0 = arith.constant 0 : i32
    %c0_i32_1 = arith.constant 0 : i32
    return %c0_i32, %c0_i32_0 : i32, i32
  }
  func.func @transform_17(%arg0: i32) -> (i32, i32) {
    %c0_i32 = arith.constant 0 : i32
    %c0_i32_0 = arith.constant 0 : i32
    %c0_i32_1 = arith.constant 0 : i32
    return %c0_i32, %c0_i32_0 : i32, i32
  }
  func.func @transform_18(%arg0: i32) -> (i32, i32) {
    %c0_i32 = arith.constant 0 : i32
    %c0_i32_0 = arith.constant 0 : i32
    return %arg0, %c0_i32 : i32, i32
  }
}

</mosaic_0001>

<bundles_post_ra>
// kernel: tpu_custom_call.1
= control target key start
LH: loop header
LB: loop body
LE: loop exit
PB: predicated region body
PF: predicated region fallthrough
CT: control target
= control target key end

     0   :  { %s7435_s0 = inlined_call_operand.vmem [shape: f32[16,32], index: 0, kind: input, shape index: {}]   ;;  %s7436_s1 = inlined_call_operand.vmem [shape: f32[2,1,16], index: 1, kind: input, shape index: {}]   ;;  %s7437_s2 = inlined_call_operand.vmem [shape: f32[16,32], index: 2, kind: input, shape index: {}]   ;;  %s7438_s3 = inlined_call_operand.vmem [shape: f32[1,32], index: 3, kind: input, shape index: {}]   ;;  %s7439_s4 = inlined_call_operand.vmem [shape: f32[2,12,32,8], index: 4, kind: input, shape index: {}]   ;;  %s7440_s5 = inlined_call_operand.vmem [shape: f32[2,12,1,8], index: 5, kind: input, shape index: {}]   ;;  %s7441_s6 = inlined_call_operand.vmem [shape: f32[2,4,8,32], index: 6, kind: input, shape index: {}]   ;;  %s7442_s7 = inlined_call_operand.vmem [shape: f32[2,1,32], index: 7, kind: input, shape index: {}]   ;;  %s7443_s8 = inlined_call_operand.vmem [shape: f32[2,1,32], index: 8, kind: input, shape index: {}]   ;;  %s7444_s9 = inlined_call_operand.vmem [shape: f32[2,1,32], index: 9, kind: input, shape index: {}]   ;;  %s7445_s10 = inlined_call_operand.vmem [shape: f32[2,32,128], index: 10, kind: input, shape index: {}]   ;;  %s7446_s11 = inlined_call_operand.vmem [shape: f32[2,1,128], index: 11, kind: input, shape index: {}]   ;;  %s7447_s12 = inlined_call_operand.vmem [shape: f32[2,128,32], index: 12, kind: input, shape index: {}]   ;;  %s7448_s13 = inlined_call_operand.vmem [shape: f32[2,1,32], index: 13, kind: input, shape index: {}]   ;;  %s7449_s14 = inlined_call_operand.vmem [shape: f32[2,1,32], index: 14, kind: input, shape index: {}]   ;;  %s7450_s15 = inlined_call_operand.vmem [shape: f32[2,1,32], index: 15, kind: input, shape index: {}]   ;;  %s7451_s16 = inlined_call_operand.vmem [shape: f32[32,128], index: 16, kind: input, shape index: {}]   ;;  %s7452_s17 = inlined_call_operand.vmem [shape: f32[1,128], index: 17, kind: input, shape index: {}]   ;;  %s7453_s18 = inlined_call_operand.hbm [shape: f32[16,128], index: 18, kind: output, shape index: {}]  }
   0x1   :  { %7459 = sst [smem:[#allocation8_spill]] %s7435_s0 }
   0x2   :  { %7460 = sst [smem:[#allocation9_spill]] %s7436_s1 }
   0x3   :  { %7461 = sst [smem:[#allocation10_spill]] %s7437_s2 }
   0x4   :  { %7462 = sst [smem:[#allocation11_spill]] %s7438_s3 }
   0x5   :  { %7463 = sst [smem:[#allocation12_spill]] %s7439_s4 }
   0x6   :  { %7464 = sst [smem:[#allocation13_spill]] %s7440_s5 }
   0x7   :  { %23 = vsyncpa [#allocation3], 0 }
   0x8   :  { %25 = vsyncpa [#allocation3 + $0x1], 0  ;;  %s6340_s27 = smov 0   ;;  %s6342_s28 = smov 0  }
   0x9   :  { %s6344_s29 = smov 0   ;;  %s6346_s30 = smov 0  }
   0xa LB: > { %7465 = sst [smem:[#allocation5_spill]] %s6236_s29  ;;  %s6361_s0 = sadd.s32 4294967295, %s6240_s30   ;;  %s6240_s30 = sphi %s6346_s30, %s7476_s30   ;;  %s6236_s29 = sphi %s6344_s29, %s7478_s29   ;;  %s6232_s28 = sphi %s6342_s28, %s7480_s28   ;;  %s6228_s27 = sphi %s6340_s27, %s7479_s27  }
   0xb   : > { %s5185_s19 = sadd.s32 4294967294, %s6240_s30   ;;  %s6365_s1 = sadd.s32 1, %s6240_s30  }
   0xc   : > { %7466 = sst [smem:[#allocation6_spill]] %s6365_s1  ;;  %s426_s20 = sadd.s32 1, %s6236_s29 }
   0xd   : > { %s423_s21 = ssub.s32 %s6240_s30, %s6365_s1  ;;  %p436_p0 = scmp.ne.s32.totalorder %s6236_s29, %s6232_s28 }
   0xe   : > { %p424_p1 = scmp.eq.s32.totalorder %s423_s21, 0  ;;  %p437_p2 = scmp.eq.s32.totalorder %s6361_s0, 1 }
   0xf   : > { %p442_p3 = scmp.ne.s32.totalorder %s6232_s28, %s6228_s27  ;;  %p443_p4 = scmp.eq.s32.totalorder %s5185_s19, 1 }
  0x10   : > { %s6376_s22 = scalar_select %p424_p1, %s6236_s29, %s426_s20  }
  0x11   : > { %p6378_p5 = por %p437_p2, %p436_p0  ;;  %p6382_p6 = por %p443_p4, %p442_p3 }
  0x12   : > { %7467 = sst [smem:[#allocation7_spill]] %s6376_s22  ;;  %p5188_p7 = scmp.ge.s32.totalorder %s6240_s30, 1 }
  0x13   : > { %p522_p8 = scmp.lt.s32.totalorder %s6240_s30, 3 }
  0x15   : > { %p523_p9 = pnand %p5188_p7, %p522_p8 }
  0x16   : > { %s7470_s26 = sld [smem:[#allocation10_spill]] (!%p523_p9)  ;;  %p578_p10 = scmp.lt.s32.totalorder (!%p523_p9), %s6361_s0, 1 }
  0x17   : > { %526 = sbr.rel (%p523_p9) target bundleno = 4745 (0x1289), region = 92  ;;  %s7471_s4 = sld [smem:[#allocation12_spill]] (!%p523_p9) }
  0x18   : > { %s7472_s20 = sld [smem:[#allocation9_spill]] (!%p523_p9)  ;;  %s5382_s1 = sshll.u32 (!%p523_p9), %s6361_s0, 7 }
  0x19   : > { %s7473_s3 = sld [smem:[#allocation11_spill]] (!%p523_p9)  ;;  %s7400_s19 = scalar_lea.hbm (!%p523_p9), %s7453_s18, %s5382_s1 }
  0x1a   : > { %s7474_s21 = sld [smem:[#allocation8_spill]] (!%p523_p9) }
  0x1b   : > { %s7475_s5 = sld [smem:[#allocation13_spill]] (!%p523_p9) }
  0x1c   : > { %v587_v0 = vld [vmem:[%s7470_s26 + $0x8] sm:$0xff]  ;;  %v6242_v1 = vmov 0.0   ;;  %v586_v2 = vld [vmem:[%s7470_s26] sm:$0xff]  ;;  %vm6243_vm0 = vmmov 0   ;;  %s6402_s24 = scalar_select %p578_p10, %s6361_s0, 1  ;;  %vm589_vm1 = vcmask 130048   ;;  %v664_v8 = vlaneseq }
  0x1d   : > { %5605 = vmatprep.subr.mxu0 %v6242_v1  ;;  %5609 = vmatprep.mubr.msk.f32.mxu0 %vm6243_vm0, %v6242_v1  ;;  %v678_v3 = vld [vmem:[%s7471_s4 + $0x18] sm:$0xff]  ;;  %v677_v6 = vld [vmem:[%s7471_s4 + $0x10] sm:$0xff]  ;;  %v676_v9 = vld [vmem:[%s7471_s4 + $0x8] sm:$0xff]  ;;  %vm807_vm3 = vcmask 261120   ;;  %vm1651_vm4 = vcmask 64512  }
  0x1e   : > { %5606 = vmatpush3.msra.mxu0 %v587_v0  ;;  %5612 = vmatprep.subr.mxu1 %v6242_v1  ;;  %s584_s26 = scalar_lea.vmem %s7472_s20, %s6402_s24  ;;  %v690_v4 = vld [vmem:[%s7471_s4 + $0x78] sm:$0xff]  ;;  %v689_v7 = vld [vmem:[%s7471_s4 + $0x70] sm:$0xff]  ;;  %v688_v10 = vld [vmem:[%s7471_s4 + $0x68] sm:$0xff]  ;;  %v6442_v13 = vshrl.u32 %v664_v8, 7  ;;  %v6444_v14 = vand.u32 127, %v664_v8  ;;  %s575_s20 = sand.u32 1, %s6232_s28  }
  0x1f   : > { %5607 = vmatprep.subr.mxu0 %v6242_v1  ;;  %5613 = vmatpush3.msra.mxu1 %v678_v3  ;;  %v585_v5 = vld [vmem:[%s584_s26] sm:$0x1]  ;;  %s5190_s26 = sshll.u32 %s6402_s24, 3  ;;  %v682_v23 = vld [vmem:[%s7471_s4 + $0x38] sm:$0xff]  ;;  %v681_v25 = vld [vmem:[%s7471_s4 + $0x30] sm:$0xff]  ;;  %s5189_s22 = sshll.u32 %s575_s20, 3 }
  0x20   : > { %5608 = vmatpush3.msra.mxu0 %v586_v2  ;;  %5614 = vmatprep.subr.mxu1 %v6242_v1  ;;  %v675_v11 = vld [vmem:[%s7471_s4] sm:$0xff]  ;;  %vm673_vm2 = vcmp.gt.s32.totalorder %v6444_v14, %v6442_v13  ;;  %s581_s29 = scalar_lea.vmem %s7474_s21, %s5190_s26  ;;  %v666_v16 = vsub.s32 0, %v6442_v13  ;;  %v698_v24 = vld [vmem:[%s7471_s4 + $0xb8] sm:$0xff]  ;;  %v697_v26 = vld [vmem:[%s7471_s4 + $0xb0] sm:$0xff]  ;;  %s5104_s26 = scalar_lea.sflag [#allocation3], %s575_s20 }
  0x21   : > { %5645 = vmatprep.subr.mxu0 %v6242_v1  ;;  %5620 = vmatprep.mubr.msk.f32.mxu1 %vm6243_vm0, %v6242_v1  ;;  %v687_v12 = vld [vmem:[%s7471_s4 + $0x60] sm:$0xff]  ;;  %v680_v27 = vld [vmem:[%s7471_s4 + $0x28] sm:$0xff]  ;;  %v686_v31 = vld [vmem:[%s7471_s4 + $0x58] sm:$0xff]  ;;  %s6244_s21 = smov [#allocation2]  }
  0x22   : > { %5610 = vmatmul.mubr.msk.f32.vlgmr.msra.gmra.mxu0 %vm589_vm1, %v585_v5  ;;  %5615 = vmatpush3.msra.mxu1 %v677_v6  ;;  %v588_v15 = vld [vmem:[%s7473_s3] sm:$0x1]  ;;  %v696_v28 = vld [vmem:[%s7471_s4 + $0xa8] sm:$0xff]  ;;  %v706_v32 = vld [vmem:[%s7471_s4 + $0xf8] sm:$0xff]  ;;  %s577_s3 = scalar_lea.vmem [#allocation2], %s5189_s22  ;;  %s6184_s0 = sshll.u32 %s6244_s21, 4  ;;  %s6185_s0 = int_to_ptr.vmem [resolvable:$false] %s6184_s0 }
  0x23   : > { %5646 = vmatpush3.msra.mxu0 %v690_v4  ;;  %5653 = vmatprep.mubr.msk.f32.mxu0 %vm6243_vm0, %v6242_v1  ;;  %v663_v19 = vld [vmem:[%s581_s29] sm:$0xff]  ;;  %v685_v33 = vld [vmem:[%s7471_s4 + $0x50] sm:$0xff]  ;;  %v684_v35 = vld [vmem:[%s7471_s4 + $0x48] sm:$0xff]  ;;  %s5117_s24 = sshll.u32 %s577_s3, 4  ;;  %s6186_s22 = scalar_lea.vmem %s6185_s0, 256  ;;  %s5118_s24 = int_to_ptr.vmem [resolvable:$true] %s5117_s24 }
  0x24   : > { %5647 = vmatprep.subr.mxu0 %v6242_v1  ;;  %5616 = vmatprep.subr.mxu1 %v6242_v1  ;;  %v679_v29 = vld [vmem:[%s7471_s4 + $0x20] sm:$0xff]  ;;  %v705_v34 = vld [vmem:[%s7471_s4 + $0xf0] sm:$0xff]  ;;  %v704_v36 = vld [vmem:[%s7471_s4 + $0xe8] sm:$0xff]  ;;  %p6187_p0 = scmp.lt.s32.totalorder %s5118_s24, %s6185_s0 }
  0x25   : > { %5648 = vmatpush3.msra.mxu0 %v689_v7  ;;  %5617 = vmatpush3.msra.mxu1 %v676_v9  ;;  %v695_v30 = vld [vmem:[%s7471_s4 + $0xa0] sm:$0xff]  ;;  %v694_v39 = vld [vmem:[%s7471_s4 + $0x98] sm:$0xff]  ;;  %v693_v41 = vld [vmem:[%s7471_s4 + $0x90] sm:$0xff] }
  0x26   : > { %5649 = vmatprep.subr.mxu0 %v6242_v1  ;;  %5618 = vmatprep.subr.mxu1 %v6242_v1  ;;  %v683_v37 = vld [vmem:[%s7471_s4 + $0x40] sm:$0xff]  ;;  %v714_v40 = vld [vmem:[%s7471_s4 + $0x138] sm:$0xff]  ;;  %v713_v42 = vld [vmem:[%s7471_s4 + $0x130] sm:$0xff] }
  0x27   : > { %5650 = vmatpush3.msra.mxu0 %v688_v10  ;;  %5619 = vmatpush3.msra.mxu1 %v675_v11  ;;  %v703_v38 = vld [vmem:[%s7471_s4 + $0xe0] sm:$0xff]  ;;  %v692_v43 = vld [vmem:[%s7471_s4 + $0x88] sm:$0xff]  ;;  %v702_v47 = vld [vmem:[%s7471_s4 + $0xd8] sm:$0xff] }
  0x28   : > { %5651 = vmatprep.subr.mxu0 %v6242_v1  ;;  %5623 = vmatprep.subr.mxu1 %v6242_v1  ;;  %v712_v44 = vld [vmem:[%s7471_s4 + $0x128] sm:$0xff]  ;;  %v691_v45 = vld [vmem:[%s7471_s4 + $0x80] sm:$0xff]  ;;  %v722_v48 = vld [vmem:[%s7471_s4 + $0x178] sm:$0xff] }
  0x29   : > { %5652 = vmatpush3.msra.mxu0 %v687_v12  ;;  %v711_v46 = vld [vmem:[%s7471_s4 + $0x120] sm:$0xff]  ;;  %v701_v49 = vld [vmem:[%s7471_s4 + $0xd0] sm:$0xff]  ;;  %v700_v51 = vld [vmem:[%s7471_s4 + $0xc8] sm:$0xff] }
  0x2a   : > { %5667 = vmatprep.subr.mxu0 %v6242_v1  ;;  %v721_v50 = vld [vmem:[%s7471_s4 + $0x170] sm:$0xff]  ;;  %v720_v52 = vld [vmem:[%s7471_s4 + $0x168] sm:$0xff]  ;;  %v699_v53 = vld [vmem:[%s7471_s4 + $0xc0] sm:$0xff] }
  0x2b   : > { %v719_v54 = vld [vmem:[%s7471_s4 + $0x160] sm:$0xff]  ;;  %v710_v55 = vld [vmem:[%s7471_s4 + $0x118] sm:$0xff]  ;;  %v709_v56 = vld [vmem:[%s7471_s4 + $0x110] sm:$0xff] }
  0x2c   : > { %v708_v57 = vld [vmem:[%s7471_s4 + $0x108] sm:$0xff]  ;;  %v707_v58 = vld [vmem:[%s7471_s4 + $0x100] sm:$0xff]  ;;  %v718_v59 = vld [vmem:[%s7471_s4 + $0x158] sm:$0xff] }
  0x2d   : > { %v717_v60 = vld [vmem:[%s7471_s4 + $0x150] sm:$0xff]  ;;  %v716_v61 = vld [vmem:[%s7471_s4 + $0x148] sm:$0xff]  ;;  %v715_v62 = vld [vmem:[%s7471_s4 + $0x140] sm:$0xff] }
  0x2e   : > { %v5197_v4 = vld [vmem:[%s7475_s5 + $0x5] ss:$0 sm:$0xff]  ;;  %v5193_v7 = vld [vmem:[%s7475_s5 + $0x1] ss:$0 sm:$0xff]  ;;  %v5199_v12 = vld [vmem:[%s7475_s5 + $0x7] ss:$0 sm:$0xff] }
  0xe2   : > { %v659_v17 = vpop.f32.mrf.mxu0 }
  0xe3   : > { %v660_v18 = vadd.f32 %v659_v17, %v588_v15  ;;  %v5195_v17 = vld [vmem:[%s7475_s5 + $0x3] ss:$0 sm:$0xff] }
  0xe4   : > { %v5611_v20 = vpop.f32.mrf.mxu0 }
  0xe5   : > { %v667_v21 = vrot.slane %v660_v18, %v666_v16 }
  0xe7   : > { %v6458_v22 = vadd.f32 %v667_v21, %v663_v19 }
  0xe9   : > { %5621 = vmatmul.mubr.msk.f32.vlgmr.msra.gmra.mxu1 %vm807_vm3, %v6458_v22  ;;  %5654 = vmatmul.mubr.msk.f32.vlgmr.msra.gmra.mxu0 %vm807_vm3, %v6458_v22 }
  0xea   : > { %5624 = vmatpush3.msra.mxu1 %v682_v23  ;;  %5668 = vmatpush3.msra.mxu0 %v698_v24  ;;  %v5196_v23 = vld [vmem:[%s7475_s5 + $0x4] ss:$0 sm:$0xff]  ;;  %v5201_v24 = vld [vmem:[%s7475_s5 + $0x9] ss:$0 sm:$0xff] }
  0xeb   : > { %5625 = vmatprep.subr.mxu1 %v6242_v1  ;;  %5669 = vmatprep.subr.mxu0 %v6242_v1 }
  0xec   : > { %5626 = vmatpush3.msra.mxu1 %v681_v25  ;;  %5670 = vmatpush3.msra.mxu0 %v697_v26  ;;  %v5192_v26 = vld [vmem:[%s7475_s5] ss:$0 sm:$0xff] }
  0xed   : > { %5627 = vmatprep.subr.mxu1 %v6242_v1  ;;  %5671 = vmatprep.subr.mxu0 %v6242_v1 }
  0xee   : > { %5628 = vmatpush3.msra.mxu1 %v680_v27  ;;  %5672 = vmatpush3.msra.mxu0 %v696_v28 }
  0xef   : > { %5629 = vmatprep.subr.mxu1 %v6242_v1  ;;  %5673 = vmatprep.subr.mxu0 %v6242_v1 }
  0xf0   : > { %5630 = vmatpush3.msra.mxu1 %v679_v29  ;;  %5631 = vmatprep.mubr.msk.f32.mxu1 %vm6243_vm0, %v6242_v1 }
  0xf1   : > { %5674 = vmatpush3.msra.mxu0 %v695_v30  ;;  %5675 = vmatprep.mubr.msk.f32.mxu0 %vm6243_vm0, %v6242_v1 }
  0xf2   : > { %5632 = vmatmul.mubr.msk.f32.vlgmr.msra.gmra.mxu1 %vm807_vm3, %v6458_v22  ;;  %5634 = vmatprep.subr.mxu1 %v6242_v1 }
  0xf3   : > { %5676 = vmatmul.mubr.msk.f32.vlgmr.msra.gmra.mxu0 %vm807_vm3, %v6458_v22  ;;  %5689 = vmatprep.subr.mxu0 %v6242_v1 }
  0xf4   : > { %5635 = vmatpush3.msra.mxu1 %v686_v31  ;;  %5690 = vmatpush3.msra.mxu0 %v706_v32 }
  0xf5   : > { %5636 = vmatprep.subr.mxu1 %v6242_v1  ;;  %5691 = vmatprep.subr.mxu0 %v6242_v1 }
  0xf6   : > { %5637 = vmatpush3.msra.mxu1 %v685_v33  ;;  %5692 = vmatpush3.msra.mxu0 %v705_v34  ;;  %v5198_v33 = vld [vmem:[%s7475_s5 + $0x6] ss:$0 sm:$0xff] }
  0xf7   : > { %5638 = vmatprep.subr.mxu1 %v6242_v1  ;;  %5693 = vmatprep.subr.mxu0 %v6242_v1 }
  0xf8   : > { %5639 = vmatpush3.msra.mxu1 %v684_v35  ;;  %5694 = vmatpush3.msra.mxu0 %v704_v36  ;;  %v5194_v35 = vld [vmem:[%s7475_s5 + $0x2] ss:$0 sm:$0xff] }
  0xf9   : > { %5640 = vmatprep.subr.mxu1 %v6242_v1  ;;  %5695 = vmatprep.subr.mxu0 %v6242_v1 }
  0xfa   : > { %5641 = vmatpush3.msra.mxu1 %v683_v37  ;;  %5642 = vmatprep.mubr.msk.f32.mxu1 %vm6243_vm0, %v6242_v1 }
  0xfb   : > { %5696 = vmatpush3.msra.mxu0 %v703_v38  ;;  %5697 = vmatprep.mubr.msk.f32.mxu0 %vm6243_vm0, %v6242_v1 }
  0xfc   : > { %5643 = vmatmul.mubr.msk.f32.vlgmr.msra.gmra.mxu1 %vm807_vm3, %v6458_v22  ;;  %5656 = vmatprep.subr.mxu1 %v6242_v1 }
  0xfd   : > { %5698 = vmatmul.mubr.msk.f32.vlgmr.msra.gmra.mxu0 %vm807_vm3, %v6458_v22  ;;  %5711 = vmatprep.subr.mxu0 %v6242_v1 }
  0xfe   : > { %5657 = vmatpush3.msra.mxu1 %v694_v39  ;;  %5712 = vmatpush3.msra.mxu0 %v714_v40 }
  0xff   : > { %5658 = vmatprep.subr.mxu1 %v6242_v1  ;;  %5713 = vmatprep.subr.mxu0 %v6242_v1 }
 0x100   : > { %5659 = vmatpush3.msra.mxu1 %v693_v41  ;;  %5714 = vmatpush3.msra.mxu0 %v713_v42  ;;  %v5200_v41 = vld [vmem:[%s7475_s5 + $0x8] ss:$0 sm:$0xff] }
 0x101   : > { %5660 = vmatprep.subr.mxu1 %v6242_v1  ;;  %5715 = vmatprep.subr.mxu0 %v6242_v1 }
 0x102   : > { %5661 = vmatpush3.msra.mxu1 %v692_v43  ;;  %5716 = vmatpush3.msra.mxu0 %v712_v44 }
 0x103   : > { %5662 = vmatprep.subr.mxu1 %v6242_v1  ;;  %5717 = vmatprep.subr.mxu0 %v6242_v1 }
 0x104   : > { %5663 = vmatpush3.msra.mxu1 %v691_v45  ;;  %5664 = vmatprep.mubr.msk.f32.mxu1 %vm6243_vm0, %v6242_v1 }
 0x105   : > { %5718 = vmatpush3.msra.mxu0 %v711_v46  ;;  %5719 = vmatprep.mubr.msk.f32.mxu0 %vm6243_vm0, %v6242_v1 }
 0x106   : > { %5665 = vmatmul.mubr.msk.f32.vlgmr.msra.gmra.mxu1 %vm807_vm3, %v6458_v22  ;;  %5678 = vmatprep.subr.mxu1 %v6242_v1 }
 0x107   : > { %5720 = vmatmul.mubr.msk.f32.vlgmr.msra.gmra.mxu0 %vm807_vm3, %v6458_v22  ;;  %5733 = vmatprep.subr.mxu0 %v6242_v1 }
 0x108   : > { %5679 = vmatpush3.msra.mxu1 %v702_v47  ;;  %5734 = vmatpush3.msra.mxu0 %v722_v48 }
 0x109   : > { %5680 = vmatprep.subr.mxu1 %v6242_v1  ;;  %5735 = vmatprep.subr.mxu0 %v6242_v1 }
 0x10a   : > { %5681 = vmatpush3.msra.mxu1 %v701_v49  ;;  %5736 = vmatpush3.msra.mxu0 %v721_v50 }
 0x10b   : > { %5682 = vmatprep.subr.mxu1 %v6242_v1  ;;  %5737 = vmatprep.subr.mxu0 %v6242_v1 }
 0x10c   : > { %5683 = vmatpush3.msra.mxu1 %v700_v51  ;;  %5738 = vmatpush3.msra.mxu0 %v720_v52  ;;  %v6726_v51 = vsel %vm673_vm2, -inf, %v6242_v1 }
 0x10d   : > { %5684 = vmatprep.subr.mxu1 %v6242_v1  ;;  %5739 = vmatprep.subr.mxu0 %v6242_v1 }
 0x10e   : > { %5685 = vmatpush3.msra.mxu1 %v699_v53  ;;  %5686 = vmatprep.mubr.msk.f32.mxu1 %vm6243_vm0, %v6242_v1 }
 0x10f   : > { %5740 = vmatpush3.msra.mxu0 %v719_v54  ;;  %5741 = vmatprep.mubr.msk.f32.mxu0 %vm6243_vm0, %v6242_v1 }
 0x110   : > { %5687 = vmatmul.mubr.msk.f32.vlgmr.msra.gmra.mxu1 %vm807_vm3, %v6458_v22  ;;  %5700 = vmatprep.subr.mxu1 %v6242_v1 }
 0x111   : > { %5742 = vmatmul.mubr.msk.f32.vlgmr.msra.gmra.mxu0 %vm807_vm3, %v6458_v22  ;;  %5701 = vmatpush3.msra.mxu1 %v710_v55 }
 0x112   : > { %5702 = vmatprep.subr.mxu1 %v6242_v1  ;;  %5708 = vmatprep.mubr.msk.f32.mxu1 %vm6243_vm0, %v6242_v1 }
 0x113   : > { %5703 = vmatpush3.msra.mxu1 %v709_v56  ;;  %5749 = vmatprep.subr.mxu0 %v6242_v1 }
 0x114   : > { %5704 = vmatprep.subr.mxu1 %v6242_v1  ;;  %5751 = vmatprep.mubr.msk.f32.mxu0 %vm6243_vm0, %v6242_v1 }
 0x115   : > { %5705 = vmatpush3.msra.mxu1 %v708_v57 }
 0x116   : > { %5706 = vmatprep.subr.mxu1 %v6242_v1 }
 0x117   : > { %5707 = vmatpush3.msra.mxu1 %v707_v58 }
 0x118   : > { %5709 = vmatmul.mubr.msk.f32.vlgmr.msra.gmra.mxu1 %vm807_vm3, %v6458_v22  ;;  %5722 = vmatprep.subr.mxu1 %v6242_v1 }
 0x119   : > { %5723 = vmatpush3.msra.mxu1 %v718_v59  ;;  %5730 = vmatprep.mubr.msk.f32.mxu1 %vm6243_vm0, %v6242_v1 }
 0x11a   : > { %5724 = vmatprep.subr.mxu1 %v6242_v1 }
 0x11b   : > { %5725 = vmatpush3.msra.mxu1 %v717_v60 }
 0x11c   : > { %5726 = vmatprep.subr.mxu1 %v6242_v1 }
 0x11d   : > { %5727 = vmatpush3.msra.mxu1 %v716_v61 }
 0x11e   : > { %5728 = vmatprep.subr.mxu1 %v6242_v1 }
 0x11f   : > { %5729 = vmatpush3.msra.mxu1 %v715_v62 }
 0x120   : > { %5731 = vmatmul.mubr.msk.f32.vlgmr.msra.gmra.mxu1 %vm807_vm3, %v6458_v22  ;;  %5744 = vmatprep.subr.mxu1 %v6242_v1 }
 0x121   : > { %5746 = vmatprep.mubr.msk.f32.mxu1 %vm6243_vm0, %v6242_v1 }
 0x1a9   : > { %v877_v63 = vpop.f32.mrf.mxu1  ;;  %v1087_v0 = vpop.f32.mrf.mxu0 }
 0x1aa   : > { %v1088_v21 = vadd.f32 %v5195_v17, %v1087_v0  ;;  %v878_v32 = vadd.f32 %v5192_v26, %v877_v63 }
 0x1ab   : > { %v5622_v2 = vpop.f32.mrf.mxu1  ;;  %v5655_v3 = vpop.f32.mrf.mxu0 }
 0x1b2   : > { %v947_v5 = vpop.f32.mrf.mxu1 }
 0x1b3   : > { %v1227_v6 = vpop.f32.mrf.mxu0  ;;  %v948_v11 = vadd.f32 %v5193_v7, %v947_v5 }
 0x1b4   : > { %v1228_v8 = vadd.f32 %v5197_v4, %v1227_v6  ;;  %v5633_v9 = vpop.f32.mrf.mxu1 }
 0x1b5   : > { %v5677_v10 = vpop.f32.mrf.mxu0 }
 0x1b6   : > { %5750 = vmatpush3.xpose.msk.msra.mxu0 %vm1651_vm4, %v1228_v8 }
 0x1b7   : > { %5759 = vmatprep.subr.mxu0 %v6242_v1 }
 0x1b9   : > { %5752 = vmatmul.mubr.msk.f32.vlgmr.msra.gmra.mxu0 %vm1651_vm4, %v948_v11 }
 0x1ba   : > { %5761 = vmatprep.mubr.msk.f32.mxu0 %vm6243_vm0, %v6242_v1 }
 0x1bc   : > { %v1017_v15 = vpop.f32.mrf.mxu1 }
 0x1bd   : > { %v1367_v16 = vpop.f32.mrf.mxu0  ;;  %v1018_v40 = vadd.f32 %v5194_v35, %v1017_v15 }
 0x1be   : > { %v1368_v18 = vadd.f32 %v5199_v12, %v1367_v16  ;;  %v5644_v19 = vpop.f32.mrf.mxu1 }
 0x1bf   : > { %v5699_v20 = vpop.f32.mrf.mxu0 }
 0x1c0   : > { %5760 = vmatpush3.xpose.msk.msra.mxu0 %vm1651_vm4, %v1368_v18 }
 0x1c1   : > { %5769 = vmatprep.subr.mxu0 %v6242_v1 }
 0x1c3   : > { %5762 = vmatmul.mubr.msk.f32.vlgmr.msra.gmra.mxu0 %vm1651_vm4, %v1088_v21 }
 0x1c4   : > { %5771 = vmatprep.mubr.msk.f32.mxu0 %vm6243_vm0, %v6242_v1 }
 0x1c6   : > { %v1157_v25 = vpop.f32.mrf.mxu1 }
 0x1c7   : > { %v1158_v27 = vadd.f32 %v5196_v23, %v1157_v25  ;;  %v1507_v28 = vpop.f32.mrf.mxu0  ;;  %v5202_v25 = vld [vmem:[%s7475_s5 + $0xa] ss:$0 sm:$0xff] }
 0x1c8   : > { %v1508_v29 = vadd.f32 %v5201_v24, %v1507_v28  ;;  %v5666_v30 = vpop.f32.mrf.mxu1 }
 0x1c9   : > { %v5721_v31 = vpop.f32.mrf.mxu0  ;;  %5745 = vmatpush3.xpose.msk.msra.mxu1 %vm1651_vm4, %v1158_v27  ;;  %v5203_v30 = vld [vmem:[%s7475_s5 + $0xb] ss:$0 sm:$0xff] }
 0x1ca   : > { %5770 = vmatpush3.msra.mxu0 %v1508_v29  ;;  %5754 = vmatprep.subr.mxu1 %v6242_v1 }
 0x1cb   : > { %5779 = vmatprep.subr.mxu0 %v6242_v1 }
 0x1cc   : > { %5747 = vmatmul.mubr.msk.f32.vlgmr.msra.gmra.mxu1 %vm1651_vm4, %v878_v32 }
 0x1cd   : > { %5756 = vmatprep.mubr.msk.f32.mxu1 %vm6243_vm0, %v6242_v1 }
 0x1d0   : > { %v1297_v34 = vpop.f32.mrf.mxu1 }
 0x1d1   : > { %v1298_v36 = vadd.f32 %v5198_v33, %v1297_v34  ;;  %v6711_v37 = vpop.f32.mrf.mxu0 }
 0x1d2   : > { %v5688_v38 = vpop.f32.mrf.mxu1  ;;  %v1648_v33 = vadd.f32 %v5203_v30, %v6711_v37  ;;  %v2292_v37 = vld [vmem:[%s7441_s6] sm:$0xff] }
 0x1d3   : > { %v5743_v39 = vpop.f32.mrf.mxu0  ;;  %5755 = vmatpush3.xpose.msk.msra.mxu1 %vm1651_vm4, %v1298_v36 }
 0x1d4   : > { %5764 = vmatprep.subr.mxu1 %v6242_v1  ;;  %v2293_v39 = vld [vmem:[%s7441_s6 + $0x8] sm:$0xff] }
 0x1d6   : > { %5757 = vmatmul.mubr.msk.f32.vlgmr.msra.gmra.mxu1 %vm1651_vm4, %v1018_v40  ;;  %v2294_v40 = vld [vmem:[%s7441_s6 + $0x10] sm:$0xff] }
 0x1d7   : > { %5766 = vmatprep.mubr.msk.f32.mxu1 %vm6243_vm0, %v6242_v1 }
 0x1d8   : > { %v1437_v42 = vpop.f32.mrf.mxu1 }
 0x1d9   : > { %v1438_v43 = vadd.f32 %v5200_v41, %v1437_v42 }
 0x1da   : > { %v5710_v44 = vpop.f32.mrf.mxu1 }
 0x1db   : > { %5765 = vmatpush3.msra.mxu1 %v1438_v43  ;;  %v2295_v43 = vld [vmem:[%s7441_s6 + $0x18] sm:$0xff] }
 0x1dc   : > { %5774 = vmatprep.subr.mxu1 %v6242_v1 }
 0x1e0   : > { %v1577_v45 = vpop.f32.mrf.mxu1 }
 0x1e1   : > { %v1578_v29 = vadd.f32 %v5202_v25, %v1577_v45  ;;  %v2725_v25 = vld [vmem:[%s7447_s12 + $0x30] sm:$0xff] }
 0x1e2   : > { %v5732_v46 = vpop.f32.mrf.mxu1 }
 0x279   : > { %v1800_v47 = vpop.f32.mrf.mxu0 }
 0x27a   : > { %v1801_v55 = vadd.f32 %v1800_v47, %v6726_v51 }
 0x27b   : > { %v5753_v48 = vpop.f32.mrf.mxu0 }
 0x27c   : > { %v1959_v57 = vsel %vm1651_vm4, %v1801_v55, -inf }
 0x283   : > { %v1952_v49 = vpop.f32.mrf.mxu0 }
 0x284   : > { %v1953_v13 = vadd.f32 %v1952_v49, %v6726_v51 }
 0x285   : > { %v5763_v50 = vpop.f32.mrf.mxu0 }
 0x286   : > { %v1965_v61 = vsel %vm1651_vm4, %v1953_v13, -inf }
 0x28c   : > { %v1724_v52 = vpop.f32.mrf.mxu1 }
 0x28d   : > { %v1725_v53 = vadd.f32 %v1724_v52, %v6726_v51 }
 0x28e   : > { %v5748_v54 = vpop.f32.mrf.mxu1 }
 0x28f   : > { %v1956_v56 = vsel %vm1651_vm4, %v1725_v53, -inf }
 0x290   : > { %1957 = vmax.xlane.f32.xlu0 %v1956_v56 }
 0x294   : > { %1960 = vmax.xlane.f32.xlu0 %v1959_v57 }
 0x296   : > { %v1876_v58 = vpop.f32.mrf.mxu1 }
 0x297   : > { %v1877_v59 = vadd.f32 %v1876_v58, %v6726_v51 }
 0x298   : > { %v5758_v60 = vpop.f32.mrf.mxu1 }
 0x299   : > { %v1962_v14 = vsel %vm1651_vm4, %v1877_v59, -inf }
 0x29a   : > { %1963 = vmax.xlane.f32.xlu1 %v1962_v14 }
 0x29e   : > { %1966 = vmax.xlane.f32.xlu1 %v1965_v61 }
 0x319   : > { %v1958_v62 = vpop.xlane.xlu0 %1957 }
 0x31a   : > { %v1968_v63 = vsub.f32 %v1725_v53, %v1958_v62  ;;  %v5232_v62 = vld [vmem:[%s7442_s7] ss:$0 sm:$0xff] }
 0x31c   : > { %v1972_v0 = vmul.f32 1.442695, %v1968_v63 }
 0x31d   : > { %v1961_v2 = vpop.xlane.xlu0 %1960 }
 0x31e   : > { %6140 = vpow2.f32 %v1972_v0  ;;  %v1969_v3 = vsub.f32 %v1801_v55, %v1961_v2 }
 0x320   : > { %v1974_v4 = vmul.f32 1.442695, %v1969_v3 }
 0x322   : > { %6142 = vpow2.f32 %v1974_v4 }
 0x323   : > { %v1964_v5 = vpop.xlane.xlu1 %1963 }
 0x324   : > { %v1970_v6 = vsub.f32 %v1877_v59, %v1964_v5 }
 0x326   : > { %v1976_v7 = vmul.f32 1.442695, %v1970_v6 }
 0x327   : > { %v1967_v8 = vpop.xlane.xlu1 %1966 }
 0x328   : > { %6144 = vpow2.f32 %v1976_v7  ;;  %v1971_v9 = vsub.f32 %v1953_v13, %v1967_v8 }
 0x32a   : > { %v1978_v10 = vmul.f32 1.442695, %v1971_v9 }
 0x32b   : > { %v6141_v11 = vpop.eup %6140 }
 0x32c   : > { %6146 = vpow2.f32 %v1978_v10  ;;  %v1980_v12 = vsel %vm1651_vm4, %v6141_v11, 0.0  ;;  %v2637_v10 = vld [vmem:[%s7445_s10 + $0x18] sm:$0xff] }
 0x32d   : > { %1981 = vadd.xlane.f32.xlu0 %v1980_v12  ;;  %v2634_v12 = vld [vmem:[%s7445_s10] sm:$0xff] }
 0x32f   : > { %v6143_v15 = vpop.eup %6142 }
 0x330   : > { %v1983_v16 = vsel %vm1651_vm4, %v6143_v15, 0.0 }
 0x331   : > { %1984 = vadd.xlane.f32.xlu1 %v1983_v16  ;;  %v2733_v16 = vld [vmem:[%s7447_s12 + $0x70] sm:$0xff] }
 0x335   : > { %v6145_v17 = vpop.eup %6144 }
 0x336   : > { %v1986_v18 = vsel %vm1651_vm4, %v6145_v17, 0.0 }
 0x337   : > { %1987 = vadd.xlane.f32.xlu0 %v1986_v18  ;;  %v2731_v18 = vld [vmem:[%s7447_s12 + $0x60] sm:$0xff] }
 0x339   : > { %v6147_v19 = vpop.eup %6146 }
 0x33a   : > { %v1989_v20 = vsel %vm1651_vm4, %v6147_v19, 0.0 }
 0x33b   : > { %1990 = vadd.xlane.f32.xlu1 %v1989_v20  ;;  %v2729_v20 = vld [vmem:[%s7447_s12 + $0x50] sm:$0xff] }
 0x3b6   : > { %v1982_v21 = vpop.xlane.xlu0 %1981 }
 0x3b7   : > { %6148 = vrcp.f32 %v1982_v21  ;;  %v2728_v21 = vld [vmem:[%s7447_s12 + $0x48] sm:$0xff] }
 0x3ba   : > { %v1985_v23 = vpop.xlane.xlu1 %1984 }
 0x3bb   : > { %6150 = vrcp.f32 %v1985_v23  ;;  %v2727_v23 = vld [vmem:[%s7447_s12 + $0x40] sm:$0xff] }
 0x3c0   : > { %v1988_v24 = vpop.xlane.xlu0 %1987 }
 0x3c1   : > { %6152 = vrcp.f32 %v1988_v24  ;;  %v2726_v24 = vld [vmem:[%s7447_s12 + $0x38] sm:$0xff] }
 0x3c4   : > { %v6149_v26 = vpop.eup %6148  ;;  %v1991_v27 = vpop.xlane.xlu1 %1990 }
 0x3c5   : > { %6154 = vrcp.f32 %v1991_v27  ;;  %v1996_v28 = vmul.f32 %v6149_v26, %v6141_v11  ;;  %v2636_v11 = vld [vmem:[%s7445_s10 + $0x10] sm:$0xff]  ;;  %v2724_v26 = vld [vmem:[%s7447_s12 + $0x28] sm:$0xff]  ;;  %v2723_v27 = vld [vmem:[%s7447_s12 + $0x20] sm:$0xff] }
 0x3c7   : > { %5767 = vmatmul.mubr.msk.f32.vlgmr.msra.gmra.mxu1 %vm1651_vm4, %v1996_v28  ;;  %v2722_v28 = vld [vmem:[%s7447_s12 + $0x18] sm:$0xff] }
 0x3c8   : > { %v6151_v31 = vpop.eup %6150  ;;  %5775 = vmatpush3.msra.mxu1 %v1578_v29  ;;  %5776 = vmatprep.mubr.msk.f32.mxu1 %vm6243_vm0, %v6242_v1 }
 0x3c9   : > { %v1997_v32 = vmul.f32 %v6151_v31, %v6143_v15  ;;  %5784 = vmatprep.subr.mxu1 %v6242_v1  ;;  %v2734_v15 = vld [vmem:[%s7447_s12 + $0x78] sm:$0xff] }
 0x3cb   : > { %5772 = vmatmul.mubr.msk.f32.vlgmr.msra.gmra.mxu0 %vm1651_vm4, %v1997_v32 }
 0x3cc   : > { %5780 = vmatpush3.msra.mxu0 %v1648_v33  ;;  %5781 = vmatprep.mubr.msk.f32.mxu0 %vm6243_vm0, %v6242_v1  ;;  %v5233_v33 = vld [vmem:[%s7443_s8] ss:$0 sm:$0xff] }
 0x3cd   : > { %5789 = vmatprep.subr.mxu0 %v6242_v1 }
 0x3ce   : > { %v6153_v34 = vpop.eup %6152 }
 0x3cf   : > { %v1998_v35 = vmul.f32 %v6153_v34, %v6145_v17  ;;  %v2732_v17 = vld [vmem:[%s7447_s12 + $0x68] sm:$0xff] }
 0x3d1   : > { %5777 = vmatmul.mubr.msk.f32.vlgmr.msra.gmra.mxu1 %vm1651_vm4, %v1998_v35  ;;  %v5234_v35 = vld [vmem:[%s7444_s9] ss:$0 sm:$0xff] }
 0x3d2   : > { %v6155_v36 = vpop.eup %6154  ;;  %5786 = vmatprep.mubr.msk.f32.mxu1 %vm6243_vm0, %v6242_v1  ;;  %5785 = vmatpush3.msra.mxu1 %v2292_v37  ;;  %v2721_v37 = vld [vmem:[%s7447_s12 + $0x10] sm:$0xff] }
 0x3d3   : > { %v1999_v38 = vmul.f32 %v6155_v36, %v6147_v19  ;;  %5794 = vmatprep.subr.mxu1 %v6242_v1  ;;  %v2730_v19 = vld [vmem:[%s7447_s12 + $0x58] sm:$0xff] }
 0x3d5   : > { %5782 = vmatmul.mubr.msk.f32.vlgmr.msra.gmra.mxu0 %vm1651_vm4, %v1999_v38 }
 0x3d6   : > { %5791 = vmatprep.mubr.msk.f32.mxu0 %vm6243_vm0, %v6242_v1  ;;  %5790 = vmatpush3.msra.mxu0 %v2293_v39  ;;  %v2720_v39 = vld [vmem:[%s7447_s12 + $0x8] sm:$0xff] }
 0x3d7   : > { %5799 = vmatprep.subr.mxu0 %v6242_v1 }
 0x487   : > { %v2069_v41 = vpop.f32.mrf.mxu1 }
 0x488   : > { %5787 = vmatmul.mubr.msk.f32.vlgmr.msra.gmra.mxu1 %vm1651_vm4, %v2069_v41  ;;  %v5235_v41 = vld [vmem:[%s7446_s11] ss:$0 sm:$0xff] }
 0x489   : > { %v5768_v42 = vpop.f32.mrf.mxu1  ;;  %5795 = vmatpush3.msra.mxu1 %v2294_v40  ;;  %5796 = vmatprep.mubr.msk.f32.mxu1 %vm6243_vm0, %v6242_v1  ;;  %v2719_v40 = vld [vmem:[%s7447_s12] sm:$0xff] }
 0x48a   : > { %5804 = vmatprep.subr.mxu1 %v6242_v1 }
 0x48b   : > { %v2142_v44 = vpop.f32.mrf.mxu0 }
 0x48c   : > { %5792 = vmatmul.mubr.msk.f32.vlgmr.msra.gmra.mxu0 %vm1651_vm4, %v2142_v44 }
 0x48d   : > { %v5773_v45 = vpop.f32.mrf.mxu0  ;;  %5800 = vmatpush3.msra.mxu0 %v2295_v43  ;;  %5801 = vmatprep.mubr.msk.f32.mxu0 %vm6243_vm0, %v6242_v1 }
 0x48e   : > { %5815 = vmatprep.subr.mxu0 %v6242_v1 }
 0x491   : > { %v2215_v46 = vpop.f32.mrf.mxu1 }
 0x492   : > { %5797 = vmatmul.mubr.msk.f32.vlgmr.msra.gmra.mxu1 %vm1651_vm4, %v2215_v46  ;;  %v5237_v46 = vld [vmem:[%s7448_s13] ss:$0 sm:$0xff] }
 0x493   : > { %v5778_v47 = vpop.f32.mrf.mxu1  ;;  %5812 = vmatprep.mubr.msk.f32.mxu1 %vm6243_vm0, %v6242_v1  ;;  %5805 = vmatpush3.msra.mxu1 %v2637_v10  ;;  %v5247_v10 = vld [vmem:[%s7471_s4 + $0x1b8] sm:$0xff] }
 0x494   : > { %5806 = vmatprep.subr.mxu1 %v6242_v1 }
 0x495   : > { %v2288_v48 = vpop.f32.mrf.mxu0  ;;  %5807 = vmatpush3.msra.mxu1 %v2636_v11  ;;  %v5267_v11 = vld [vmem:[%s7471_s4 + $0x258] sm:$0xff] }
 0x496   : > { %5802 = vmatmul.mubr.msk.f32.vlgmr.msra.gmra.mxu0 %vm1651_vm4, %v2288_v48  ;;  %5808 = vmatprep.subr.mxu1 %v6242_v1 }
 0x497   : > { %v5783_v49 = vpop.f32.mrf.mxu0  ;;  %5847 = vmatprep.mubr.msk.f32.mxu0 %vm6243_vm0, %v6242_v1  ;;  %5816 = vmatpush3.msra.mxu0 %v2734_v15  ;;  %v5245_v15 = vld [vmem:[%s7471_s4 + $0x1a8] sm:$0xff] }
 0x498   : > { %5817 = vmatprep.subr.mxu0 %v6242_v1 }
 0x499   : > { %5818 = vmatpush3.msra.mxu0 %v2733_v16  ;;  %v5265_v16 = vld [vmem:[%s7471_s4 + $0x248] sm:$0xff] }
 0x49a   : > { %5819 = vmatprep.subr.mxu0 %v6242_v1 }
 0x49b   : > { %5820 = vmatpush3.msra.mxu0 %v2732_v17  ;;  %v5244_v17 = vld [vmem:[%s7471_s4 + $0x1a0] sm:$0xff] }
 0x49c   : > { %5821 = vmatprep.subr.mxu0 %v6242_v1 }
 0x49d   : > { %5822 = vmatpush3.msra.mxu0 %v2731_v18  ;;  %v5264_v18 = vld [vmem:[%s7471_s4 + $0x240] sm:$0xff] }
 0x49e   : > { %5823 = vmatprep.subr.mxu0 %v6242_v1 }
 0x49f   : > { %5824 = vmatpush3.msra.mxu0 %v2730_v19  ;;  %v5251_v19 = vld [vmem:[%s7471_s4 + $0x1d8] sm:$0xff] }
 0x4a0   : > { %5825 = vmatprep.subr.mxu0 %v6242_v1 }
 0x4a1   : > { %5826 = vmatpush3.msra.mxu0 %v2729_v20  ;;  %v5275_v20 = vld [vmem:[%s7471_s4 + $0x298] sm:$0xff] }
 0x4a2   : > { %5827 = vmatprep.subr.mxu0 %v6242_v1 }
 0x4a3   : > { %5828 = vmatpush3.msra.mxu0 %v2728_v21  ;;  %v5250_v21 = vld [vmem:[%s7471_s4 + $0x1d0] sm:$0xff] }
 0x4a4   : > { %5829 = vmatprep.subr.mxu0 %v6242_v1 }
 0x4a5   : > { %5830 = vmatpush3.msra.mxu0 %v2727_v23  ;;  %v5274_v23 = vld [vmem:[%s7471_s4 + $0x290] sm:$0xff] }
 0x4a6   : > { %5831 = vmatprep.subr.mxu0 %v6242_v1 }
 0x4a7   : > { %5832 = vmatpush3.msra.mxu0 %v2726_v24  ;;  %v5249_v24 = vld [vmem:[%s7471_s4 + $0x1c8] sm:$0xff] }
 0x4a8   : > { %5833 = vmatprep.subr.mxu0 %v6242_v1 }
 0x4a9   : > { %5834 = vmatpush3.msra.mxu0 %v2725_v25  ;;  %v5273_v25 = vld [vmem:[%s7471_s4 + $0x288] sm:$0xff] }
 0x4aa   : > { %5835 = vmatprep.subr.mxu0 %v6242_v1 }
 0x4ab   : > { %5836 = vmatpush3.msra.mxu0 %v2724_v26  ;;  %v5248_v26 = vld [vmem:[%s7471_s4 + $0x1c0] sm:$0xff] }
 0x4ac   : > { %5837 = vmatprep.subr.mxu0 %v6242_v1 }
 0x4ad   : > { %5838 = vmatpush3.msra.mxu0 %v2723_v27  ;;  %v5272_v27 = vld [vmem:[%s7471_s4 + $0x280] sm:$0xff] }
 0x4ae   : > { %5839 = vmatprep.subr.mxu0 %v6242_v1 }
 0x4af   : > { %5840 = vmatpush3.msra.mxu0 %v2722_v28  ;;  %v5255_v28 = vld [vmem:[%s7471_s4 + $0x1f8] sm:$0xff] }
 0x4b0   : > { %5841 = vmatprep.subr.mxu0 %v6242_v1 }
 0x4b1   : > { %5842 = vmatpush3.msra.mxu0 %v2721_v37  ;;  %v5261_v37 = vld [vmem:[%s7471_s4 + $0x228] sm:$0xff] }
 0x4b2   : > { %5843 = vmatprep.subr.mxu0 %v6242_v1 }
 0x4b3   : > { %5844 = vmatpush3.msra.mxu0 %v2720_v39  ;;  %v5260_v39 = vld [vmem:[%s7471_s4 + $0x220] sm:$0xff] }
 0x4b4   : > { %5845 = vmatprep.subr.mxu0 %v6242_v1 }
 0x4b5   : > { %5846 = vmatpush3.msra.mxu0 %v2719_v40  ;;  %v5271_v40 = vld [vmem:[%s7471_s4 + $0x278] sm:$0xff] }
 0x4b6   : > { %5894 = vmatprep.subr.mxu0 %v6242_v1 }
 0x548   : > { %v2365_v50 = vpop.f32.mrf.mxu1 }
 0x549   : > { %v2588_v57 = vsel %vm807_vm3, %v2365_v50, 0.0 }
 0x54a   : > { %v5788_v52 = vpop.f32.mrf.mxu1 }
 0x54c   : > { %v2438_v53 = vpop.f32.mrf.mxu0 }
 0x54d   : > { %v2589_v55 = vsel %vm807_vm3, %v2438_v53, 0.0 }
 0x54e   : > { %v5793_v54 = vpop.f32.mrf.mxu0  ;;  %v2590_v59 = vadd.f32 %v2589_v55, %v2588_v57 }
 0x552   : > { %v2511_v56 = vpop.f32.mrf.mxu1 }
 0x553   : > { %v2591_v58 = vsel %vm807_vm3, %v2511_v56, 0.0 }
 0x554   : > { %v5798_v60 = vpop.f32.mrf.mxu1  ;;  %v2592_v13 = vadd.f32 %v2591_v58, %v2590_v59  ;;  %v5243_v58 = vld [vmem:[%s7471_s4 + $0x198] sm:$0xff] }
 0x555   : > { %v5259_v59 = vld [vmem:[%s7471_s4 + $0x218] sm:$0xff]  ;;  %v5242_v60 = vld [vmem:[%s7471_s4 + $0x190] sm:$0xff] }
 0x556   : > { %v2584_v14 = vpop.f32.mrf.mxu0 }
 0x557   : > { %v2593_v61 = vsel %vm807_vm3, %v2584_v14, 0.0  ;;  %v5241_v14 = vld [vmem:[%s7471_s4 + $0x188] sm:$0xff] }
 0x558   : > { %v2594_v63 = vadd.f32 %v2593_v61, %v2592_v13  ;;  %v5803_v0 = vpop.f32.mrf.mxu0  ;;  %v5258_v13 = vld [vmem:[%s7471_s4 + $0x210] sm:$0xff]  ;;  %v5257_v61 = vld [vmem:[%s7471_s4 + $0x208] sm:$0xff] }
 0x55a   : > { %v2602_v2 = vadd.f32 %v5232_v62, %v2594_v63  ;;  %v5240_v62 = vld [vmem:[%s7471_s4 + $0x180] sm:$0xff] }
 0x55b   : > { %v5256_v63 = vld [vmem:[%s7471_s4 + $0x200] sm:$0xff] }
 0x55c   : > { %v2603_v3 = vadd.f32 %v2602_v2, %v6458_v22  ;;  %v2635_v22 = vld [vmem:[%s7445_s10 + $0x8] sm:$0xff] }
 0x55d   : > { %5809 = vmatpush3.msra.mxu1 %v2635_v22  ;;  %v5246_v22 = vld [vmem:[%s7471_s4 + $0x1b0] sm:$0xff] }
 0x55e   : > { %v2604_v4 = vsel %vm807_vm3, %v2603_v3, 0.0  ;;  %5810 = vmatprep.subr.mxu1 %v6242_v1 }
 0x55f   : > { %2605 = vadd.xlane.f32.xlu0 %v2604_v4  ;;  %5811 = vmatpush3.msra.mxu1 %v2634_v12  ;;  %v5266_v12 = vld [vmem:[%s7471_s4 + $0x250] sm:$0xff] }
 0x560   : > { %5850 = vmatprep.subr.mxu1 %v6242_v1 }
 0x5e8   : > { %v2606_v5 = vpop.xlane.xlu0 %2605 }
 0x5e9   : > { %v2608_v6 = vmul.f32 0.03125, %v2606_v5  ;;  %v5238_v5 = vld [vmem:[%s7449_s14] ss:$0 sm:$0xff] }
 0x5eb   : > { %v2609_v7 = vsub.f32 %v2603_v3, %v2608_v6 }
 0x5ed   : > { %v2610_v8 = vmul.f32 %v2609_v7, %v2609_v7 }
 0x5ef   : > { %v2611_v9 = vsel %vm807_vm3, %v2610_v8, 0.0 }
 0x5f0   : > { %2612 = vadd.xlane.f32.xlu1 %v2611_v9 }
 0x679   : > { %v2613_v29 = vpop.xlane.xlu1 %2612 }
 0x67a   : > { %v2614_v30 = vmul.f32 0.03125, %v2613_v29  ;;  %v5283_v29 = vld [vmem:[%s7471_s4 + $0x2d8] sm:$0xff] }
 0x67c   : > { %v2615_v31 = vadd.f32 1e-05, %v2614_v30  ;;  %v5254_v30 = vld [vmem:[%s7471_s4 + $0x1f0] sm:$0xff] }
 0x67e   : > { %6156 = vrsqrt.f32 %v2615_v31  ;;  %v5282_v31 = vld [vmem:[%s7471_s4 + $0x2d0] sm:$0xff] }
 0x68b   : > { %v6157_v32 = vpop.eup %6156 }
 0x68c   : > { %v2617_v34 = vmul.f32 %v6157_v32, %v2609_v7  ;;  %v5239_v7 = vld [vmem:[%s7450_s15] ss:$0 sm:$0xff]  ;;  %v5253_v32 = vld [vmem:[%s7471_s4 + $0x1e8] sm:$0xff] }
 0x68e   : > { %v2625_v36 = vmul.f32 %v5233_v33, %v2617_v34  ;;  %v5281_v33 = vld [vmem:[%s7471_s4 + $0x2c8] sm:$0xff]  ;;  %v5252_v34 = vld [vmem:[%s7471_s4 + $0x1e0] sm:$0xff] }
 0x690   : > { %v2633_v38 = vadd.f32 %v5234_v35, %v2625_v36  ;;  %v5280_v35 = vld [vmem:[%s7471_s4 + $0x2c0] sm:$0xff]  ;;  %v5263_v36 = vld [vmem:[%s7471_s4 + $0x238] sm:$0xff] }
 0x692   : > { %5813 = vmatmul.mubr.msk.f32.vlgmr.msra.gmra.mxu1 %vm807_vm3, %v2633_v38 }
 0x693   : > { %5858 = vmatprep.mubr.msk.f32.mxu1 %vm6243_vm0, %v6242_v1  ;;  %5851 = vmatpush3.msra.mxu1 %v5243_v58 }
 0x694   : > { %5852 = vmatprep.subr.mxu1 %v6242_v1 }
 0x695   : > { %5853 = vmatpush3.msra.mxu1 %v5242_v60 }
 0x696   : > { %5854 = vmatprep.subr.mxu1 %v6242_v1 }
 0x697   : > { %5855 = vmatpush3.msra.mxu1 %v5241_v14 }
 0x698   : > { %5856 = vmatprep.subr.mxu1 %v6242_v1 }
 0x699   : > { %5857 = vmatpush3.msra.mxu1 %v5240_v62 }
 0x69a   : > { %5861 = vmatprep.subr.mxu1 %v6242_v1 }
 0x752   : > { %v2714_v42 = vpop.f32.mrf.mxu1 }
 0x753   : > { %v2715_v43 = vadd.f32 %v5235_v41, %v2714_v42  ;;  %v5270_v41 = vld [vmem:[%s7471_s4 + $0x270] sm:$0xff]  ;;  %v5269_v42 = vld [vmem:[%s7471_s4 + $0x268] sm:$0xff] }
 0x754   : > { %v5814_v44 = vpop.f32.mrf.mxu1 }
 0x755   : > { %v2718_v45 = vmax.f32 %v2715_v43, 0.0  ;;  %v5268_v43 = vld [vmem:[%s7471_s4 + $0x260] sm:$0xff]  ;;  %v5279_v44 = vld [vmem:[%s7471_s4 + $0x2b8] sm:$0xff] }
 0x757   : > { %5848 = vmatmul.mubr.f32.vlgmr.msra.gmra.mxu0 %v2718_v45  ;;  %v5278_v45 = vld [vmem:[%s7471_s4 + $0x2b0] sm:$0xff] }
 0x758   : > { %5902 = vmatprep.mubr.msk.f32.mxu0 %vm6243_vm0, %v6242_v1  ;;  %5895 = vmatpush3.msra.mxu0 %v5259_v59 }
 0x759   : > { %5896 = vmatprep.subr.mxu0 %v6242_v1 }
 0x75a   : > { %5897 = vmatpush3.msra.mxu0 %v5258_v13  ;;  %v5306_v13 = vld [vmem:[%s7475_s5 + $0x12] ss:$0 sm:$0xff] }
 0x75b   : > { %5898 = vmatprep.subr.mxu0 %v6242_v1 }
 0x75c   : > { %5899 = vmatpush3.msra.mxu0 %v5257_v61 }
 0x75d   : > { %5900 = vmatprep.subr.mxu0 %v6242_v1 }
 0x75e   : > { %5901 = vmatpush3.msra.mxu0 %v5256_v63 }
 0x75f   : > { %5916 = vmatprep.subr.mxu0 %v6242_v1 }
 0x817   : > { %v2808_v47 = vpop.f32.mrf.mxu0 }
 0x818   : > { %v2809_v48 = vadd.f32 %v5237_v46, %v2808_v47  ;;  %v5277_v46 = vld [vmem:[%s7471_s4 + $0x2a8] sm:$0xff]  ;;  %v5276_v47 = vld [vmem:[%s7471_s4 + $0x2a0] sm:$0xff] }
 0x819   : > { %v5849_v49 = vpop.f32.mrf.mxu0 }
 0x81a   : > { %v2812_v50 = vadd.f32 %v2809_v48, %v2633_v38  ;;  %v5262_v38 = vld [vmem:[%s7471_s4 + $0x230] sm:$0xff]  ;;  %v5287_v48 = vld [vmem:[%s7471_s4 + $0x2f8] sm:$0xff] }
 0x81b   : > { %v5286_v49 = vld [vmem:[%s7471_s4 + $0x2f0] sm:$0xff] }
 0x81c   : > { %v2813_v52 = vsel %vm807_vm3, %v2812_v50, 0.0 }
 0x81d   : > { %2814 = vadd.xlane.f32.xlu0 %v2813_v52  ;;  %v5284_v52 = vld [vmem:[%s7471_s4 + $0x2e0] sm:$0xff] }
 0x8a6   : > { %v2815_v53 = vpop.xlane.xlu0 %2814 }
 0x8a7   : > { %v2816_v54 = vmul.f32 0.03125, %v2815_v53  ;;  %v5304_v53 = vld [vmem:[%s7475_s5 + $0x10] ss:$0 sm:$0xff] }
 0x8a9   : > { %v2817_v55 = vsub.f32 %v2812_v50, %v2816_v54  ;;  %v5285_v50 = vld [vmem:[%s7471_s4 + $0x2e8] sm:$0xff] }
 0x8ab   : > { %v2818_v56 = vmul.f32 %v2817_v55, %v2817_v55 }
 0x8ad   : > { %v2819_v57 = vsel %vm807_vm3, %v2818_v56, 0.0  ;;  %v5300_v56 = vld [vmem:[%s7475_s5 + $0xc] ss:$0 sm:$0xff] }
 0x8ae   : > { %2820 = vadd.xlane.f32.xlu1 %v2819_v57 }
 0x937   : > { %v2821_v0 = vpop.xlane.xlu1 %2820 }
 0x938   : > { %v2822_v2 = vmul.f32 0.03125, %v2821_v0 }
 0x93a   : > { %v2823_v3 = vadd.f32 1e-05, %v2822_v2  ;;  %v5302_v2 = vld [vmem:[%s7475_s5 + $0xe] ss:$0 sm:$0xff] }
 0x93c   : > { %6158 = vrsqrt.f32 %v2823_v3  ;;  %v5308_v3 = vld [vmem:[%s7475_s5 + $0x14] ss:$0 sm:$0xff] }
 0x949   : > { %v6159_v4 = vpop.eup %6158 }
 0x94a   : > { %v2825_v6 = vmul.f32 %v6159_v4, %v2817_v55 }
 0x94c   : > { %v2833_v8 = vmul.f32 %v5238_v5, %v2825_v6 }
 0x94e   : > { %v6936_v9 = vadd.f32 %v5239_v7, %v2833_v8 }
 0x950   : > { %5859 = vmatmul.mubr.msk.f32.vlgmr.msra.gmra.mxu1 %vm807_vm3, %v6936_v9  ;;  %5903 = vmatmul.mubr.msk.f32.vlgmr.msra.gmra.mxu0 %vm807_vm3, %v6936_v9 }
 0x951   : > { %5862 = vmatpush3.msra.mxu1 %v5247_v10  ;;  %5917 = vmatpush3.msra.mxu0 %v5267_v11 }
 0x952   : > { %5863 = vmatprep.subr.mxu1 %v6242_v1  ;;  %5918 = vmatprep.subr.mxu0 %v6242_v1 }
 0x953   : > { %5864 = vmatpush3.msra.mxu1 %v5246_v22  ;;  %5919 = vmatpush3.msra.mxu0 %v5266_v12 }
 0x954   : > { %5865 = vmatprep.subr.mxu1 %v6242_v1  ;;  %5920 = vmatprep.subr.mxu0 %v6242_v1 }
 0x955   : > { %5866 = vmatpush3.msra.mxu1 %v5245_v15  ;;  %5921 = vmatpush3.msra.mxu0 %v5265_v16  ;;  %v5305_v16 = vld [vmem:[%s7475_s5 + $0x11] ss:$0 sm:$0xff] }
 0x956   : > { %5867 = vmatprep.subr.mxu1 %v6242_v1  ;;  %5922 = vmatprep.subr.mxu0 %v6242_v1 }
 0x957   : > { %5868 = vmatpush3.msra.mxu1 %v5244_v17  ;;  %5869 = vmatprep.mubr.msk.f32.mxu1 %vm6243_vm0, %v6242_v1 }
 0x958   : > { %5923 = vmatpush3.msra.mxu0 %v5264_v18  ;;  %5924 = vmatprep.mubr.msk.f32.mxu0 %vm6243_vm0, %v6242_v1  ;;  %v5301_v18 = vld [vmem:[%s7475_s5 + $0xd] ss:$0 sm:$0xff] }
 0x959   : > { %5870 = vmatmul.mubr.msk.f32.vlgmr.msra.gmra.mxu1 %vm807_vm3, %v6936_v9  ;;  %5872 = vmatprep.subr.mxu1 %v6242_v1 }
 0x95a   : > { %5925 = vmatmul.mubr.msk.f32.vlgmr.msra.gmra.mxu0 %vm807_vm3, %v6936_v9  ;;  %5938 = vmatprep.subr.mxu0 %v6242_v1 }
 0x95b   : > { %5873 = vmatpush3.msra.mxu1 %v5251_v19  ;;  %5939 = vmatpush3.msra.mxu0 %v5275_v20 }
 0x95c   : > { %5874 = vmatprep.subr.mxu1 %v6242_v1  ;;  %5940 = vmatprep.subr.mxu0 %v6242_v1 }
 0x95d   : > { %5875 = vmatpush3.msra.mxu1 %v5250_v21  ;;  %5941 = vmatpush3.msra.mxu0 %v5274_v23  ;;  %v5307_v23 = vld [vmem:[%s7475_s5 + $0x13] ss:$0 sm:$0xff] }
 0x95e   : > { %5876 = vmatprep.subr.mxu1 %v6242_v1  ;;  %5942 = vmatprep.subr.mxu0 %v6242_v1 }
 0x95f   : > { %5877 = vmatpush3.msra.mxu1 %v5249_v24  ;;  %5943 = vmatpush3.msra.mxu0 %v5273_v25  ;;  %v5303_v25 = vld [vmem:[%s7475_s5 + $0xf] ss:$0 sm:$0xff] }
 0x960   : > { %5878 = vmatprep.subr.mxu1 %v6242_v1  ;;  %5944 = vmatprep.subr.mxu0 %v6242_v1 }
 0x961   : > { %5879 = vmatpush3.msra.mxu1 %v5248_v26  ;;  %5880 = vmatprep.mubr.msk.f32.mxu1 %vm6243_vm0, %v6242_v1 }
 0x962   : > { %5945 = vmatpush3.msra.mxu0 %v5272_v27  ;;  %5946 = vmatprep.mubr.msk.f32.mxu0 %vm6243_vm0, %v6242_v1 }
 0x963   : > { %5881 = vmatmul.mubr.msk.f32.vlgmr.msra.gmra.mxu1 %vm807_vm3, %v6936_v9  ;;  %5883 = vmatprep.subr.mxu1 %v6242_v1 }
 0x964   : > { %5947 = vmatmul.mubr.msk.f32.vlgmr.msra.gmra.mxu0 %vm807_vm3, %v6936_v9  ;;  %5960 = vmatprep.subr.mxu0 %v6242_v1 }
 0x965   : > { %5884 = vmatpush3.msra.mxu1 %v5255_v28  ;;  %5961 = vmatpush3.msra.mxu0 %v5283_v29  ;;  %v5309_v29 = vld [vmem:[%s7475_s5 + $0x15] ss:$0 sm:$0xff] }
 0x966   : > { %5885 = vmatprep.subr.mxu1 %v6242_v1  ;;  %5962 = vmatprep.subr.mxu0 %v6242_v1 }
 0x967   : > { %5886 = vmatpush3.msra.mxu1 %v5254_v30  ;;  %5963 = vmatpush3.msra.mxu0 %v5282_v31 }
 0x968   : > { %5887 = vmatprep.subr.mxu1 %v6242_v1  ;;  %5964 = vmatprep.subr.mxu0 %v6242_v1 }
 0x969   : > { %5888 = vmatpush3.msra.mxu1 %v5253_v32  ;;  %5965 = vmatpush3.msra.mxu0 %v5281_v33 }
 0x96a   : > { %5889 = vmatprep.subr.mxu1 %v6242_v1  ;;  %5966 = vmatprep.subr.mxu0 %v6242_v1 }
 0x96b   : > { %5890 = vmatpush3.msra.mxu1 %v5252_v34  ;;  %5891 = vmatprep.mubr.msk.f32.mxu1 %vm6243_vm0, %v6242_v1 }
 0x96c   : > { %5967 = vmatpush3.msra.mxu0 %v5280_v35  ;;  %5968 = vmatprep.mubr.msk.f32.mxu0 %vm6243_vm0, %v6242_v1 }
 0x96d   : > { %5892 = vmatmul.mubr.msk.f32.vlgmr.msra.gmra.mxu1 %vm807_vm3, %v6936_v9  ;;  %5905 = vmatprep.subr.mxu1 %v6242_v1 }
 0x96e   : > { %5969 = vmatmul.mubr.msk.f32.vlgmr.msra.gmra.mxu0 %vm807_vm3, %v6936_v9  ;;  %5906 = vmatpush3.msra.mxu1 %v5263_v36 }
 0x96f   : > { %5907 = vmatprep.subr.mxu1 %v6242_v1  ;;  %5913 = vmatprep.mubr.msk.f32.mxu1 %vm6243_vm0, %v6242_v1 }
 0x970   : > { %5908 = vmatpush3.msra.mxu1 %v5262_v38  ;;  %5982 = vmatprep.subr.mxu0 %v6242_v1 }
 0x971   : > { %5909 = vmatprep.subr.mxu1 %v6242_v1  ;;  %5984 = vmatprep.mubr.msk.f32.mxu0 %vm6243_vm0, %v6242_v1 }
 0x972   : > { %5910 = vmatpush3.msra.mxu1 %v5261_v37 }
 0x973   : > { %5911 = vmatprep.subr.mxu1 %v6242_v1 }
 0x974   : > { %5912 = vmatpush3.msra.mxu1 %v5260_v39 }
 0x975   : > { %5914 = vmatmul.mubr.msk.f32.vlgmr.msra.gmra.mxu1 %vm807_vm3, %v6936_v9  ;;  %5927 = vmatprep.subr.mxu1 %v6242_v1 }
 0x976   : > { %5928 = vmatpush3.msra.mxu1 %v5271_v40  ;;  %5935 = vmatprep.mubr.msk.f32.mxu1 %vm6243_vm0, %v6242_v1 }
 0x977   : > { %5929 = vmatprep.subr.mxu1 %v6242_v1 }
 0x978   : > { %5930 = vmatpush3.msra.mxu1 %v5270_v41 }
 0x979   : > { %5931 = vmatprep.subr.mxu1 %v6242_v1 }
 0x97a   : > { %5932 = vmatpush3.msra.mxu1 %v5269_v42 }
 0x97b   : > { %5933 = vmatprep.subr.mxu1 %v6242_v1 }
 0x97c   : > { %5934 = vmatpush3.msra.mxu1 %v5268_v43 }
 0x97d   : > { %5936 = vmatmul.mubr.msk.f32.vlgmr.msra.gmra.mxu1 %vm807_vm3, %v6936_v9  ;;  %5949 = vmatprep.subr.mxu1 %v6242_v1 }
 0x97e   : > { %5950 = vmatpush3.msra.mxu1 %v5279_v44  ;;  %5957 = vmatprep.mubr.msk.f32.mxu1 %vm6243_vm0, %v6242_v1 }
 0x97f   : > { %5951 = vmatprep.subr.mxu1 %v6242_v1 }
 0x980   : > { %5952 = vmatpush3.msra.mxu1 %v5278_v45 }
 0x981   : > { %5953 = vmatprep.subr.mxu1 %v6242_v1 }
 0x982   : > { %5954 = vmatpush3.msra.mxu1 %v5277_v46 }
 0x983   : > { %5955 = vmatprep.subr.mxu1 %v6242_v1 }
 0x984   : > { %5956 = vmatpush3.msra.mxu1 %v5276_v47 }
 0x985   : > { %5958 = vmatmul.mubr.msk.f32.vlgmr.msra.gmra.mxu1 %vm807_vm3, %v6936_v9  ;;  %5971 = vmatprep.subr.mxu1 %v6242_v1 }
 0x986   : > { %5972 = vmatpush3.msra.mxu1 %v5287_v48  ;;  %5979 = vmatprep.mubr.msk.f32.mxu1 %vm6243_vm0, %v6242_v1 }
 0x987   : > { %5973 = vmatprep.subr.mxu1 %v6242_v1 }
 0x988   : > { %5974 = vmatpush3.msra.mxu1 %v5286_v49 }
 0x989   : > { %5975 = vmatprep.subr.mxu1 %v6242_v1 }
 0x98a   : > { %5976 = vmatpush3.msra.mxu1 %v5285_v50 }
 0x98b   : > { %5977 = vmatprep.subr.mxu1 %v6242_v1 }
 0x98c   : > { %5978 = vmatpush3.msra.mxu1 %v5284_v52 }
 0x98d   : > { %5980 = vmatmul.mubr.msk.f32.vlgmr.msra.gmra.mxu1 %vm807_vm3, %v6936_v9  ;;  %5992 = vmatprep.subr.mxu1 %v6242_v1 }
 0x98e   : > { %5994 = vmatprep.mubr.msk.f32.mxu1 %vm6243_vm0, %v6242_v1 }
 0xa10   : > { %v3045_v54 = vpop.f32.mrf.mxu1  ;;  %v3325_v55 = vpop.f32.mrf.mxu0 }
 0xa11   : > { %v3326_v57 = vadd.f32 %v5304_v53, %v3325_v55  ;;  %v3046_v60 = vadd.f32 %v5300_v56, %v3045_v54 }
 0xa12   : > { %v5860_v58 = vpop.f32.mrf.mxu1  ;;  %v5904_v59 = vpop.f32.mrf.mxu0 }
 0xa13   : > { %5983 = vmatpush3.xpose.msk.msra.mxu0 %vm1651_vm4, %v3326_v57 }
 0xa14   : > { %5987 = vmatprep.subr.mxu0 %v6242_v1 }
 0xa16   : > { %5985 = vmatmul.mubr.msk.f32.vlgmr.msra.gmra.mxu0 %vm1651_vm4, %v3046_v60 }
 0xa17   : > { %5989 = vmatprep.mubr.msk.f32.mxu0 %vm6243_vm0, %v6242_v1 }
 0xa19   : > { %v3115_v14 = vpop.f32.mrf.mxu1 }
 0xa1a   : > { %v3465_v61 = vpop.f32.mrf.mxu0  ;;  %v3116_v21 = vadd.f32 %v5301_v18, %v3115_v14  ;;  %v5311_v18 = vld [vmem:[%s7475_s5 + $0x17] ss:$0 sm:$0xff] }
 0xa1b   : > { %v3466_v62 = vadd.f32 %v5306_v13, %v3465_v61  ;;  %v5871_v63 = vpop.f32.mrf.mxu1 }
 0xa1c   : > { %v5926_v0 = vpop.f32.mrf.mxu0 }
 0xa1d   : > { %5993 = vmatpush3.xpose.msk.msra.mxu1 %vm1651_vm4, %v3466_v62 }
 0xa1e   : > { %6002 = vmatprep.subr.mxu1 %v6242_v1 }
 0xa23   : > { %v3185_v4 = vpop.f32.mrf.mxu1 }
 0xa24   : > { %v3186_v5 = vadd.f32 %v5302_v2, %v3185_v4  ;;  %v3605_v6 = vpop.f32.mrf.mxu0 }
 0xa25   : > { %v3606_v7 = vadd.f32 %v5308_v3, %v3605_v6  ;;  %v5882_v8 = vpop.f32.mrf.mxu1 }
 0xa26   : > { %v5948_v10 = vpop.f32.mrf.mxu0  ;;  %5995 = vmatmul.mubr.msk.f32.vlgmr.msra.gmra.mxu1 %vm1651_vm4, %v3186_v5 }
 0xa27   : > { %6003 = vmatpush3.msra.mxu1 %v3606_v7  ;;  %6004 = vmatprep.mubr.msk.f32.mxu1 %vm6243_vm0, %v6242_v1  ;;  %v5310_v7 = vld [vmem:[%s7475_s5 + $0x16] ss:$0 sm:$0xff]  ;;  %s6180_s5 = scalar_lea.vmem %s5118_s24, 128 }
 0xa28   : > { %6012 = vmatprep.subr.mxu1 %v6242_v1  ;;  %p6181_p11 = scmp.ne.s32.totalorder %s5118_s24, %s6180_s5  ;;  %p6188_p1 = scmp.lt.s32.totalorder %s6186_s22, %s6180_s5 }
 0xa2a   : > { %p6182_p12 = pnand %p6181_p11, %p6378_p5  ;;  %p6189_p2 = por %p6188_p1, %p6187_p0 }
 0xa2c   : > { %p6183_p13 = pneg %p6182_p12 }
 0xa2d   : > { %v3255_v11 = vpop.f32.mrf.mxu1 }
 0xa2e   : > { %v7172_v22 = vpop.f32.mrf.mxu0  ;;  %v3256_v28 = vadd.f32 %v5303_v25, %v3255_v11  ;;  %v5336_v25 = vld [vmem:[%s7441_s6 + $0x20] sm:$0xff]  ;;  %p6190_p3 = pnand %p6189_p2, %p6183_p13 }
 0xa2f   : > { %v5893_v12 = vpop.f32.mrf.mxu1  ;;  %v3746_v11 = vadd.f32 %v5310_v7, %v7172_v22  ;;  %v5364_v7 = vld [vmem:[%s7447_s12 + $0xb8] sm:$0xff] }
 0xa30   : > { %v5970_v15 = vpop.f32.mrf.mxu0 }
 0xa35   : > { %v3395_v17 = vpop.f32.mrf.mxu1 }
 0xa36   : > { %v3396_v19 = vadd.f32 %v5305_v16, %v3395_v17 }
 0xa37   : > { %v5915_v20 = vpop.f32.mrf.mxu1 }
 0xa38   : > { %5988 = vmatpush3.xpose.msk.msra.mxu0 %vm1651_vm4, %v3396_v19 }
 0xa39   : > { %5997 = vmatprep.subr.mxu0 %v6242_v1 }
 0xa3b   : > { %5990 = vmatmul.mubr.msk.f32.vlgmr.msra.gmra.mxu0 %vm1651_vm4, %v3116_v21 }
 0xa3c   : > { %5999 = vmatprep.mubr.msk.f32.mxu0 %vm6243_vm0, %v6242_v1 }
 0xa3d   : > { %v3535_v24 = vpop.f32.mrf.mxu1 }
 0xa3e   : > { %v3536_v26 = vadd.f32 %v5307_v23, %v3535_v24 }
 0xa3f   : > { %v5937_v27 = vpop.f32.mrf.mxu1 }
 0xa40   : > { %5998 = vmatpush3.xpose.msk.msra.mxu0 %vm1651_vm4, %v3536_v26  ;;  %v5337_v26 = vld [vmem:[%s7441_s6 + $0x28] sm:$0xff]  ;;  %v5338_v27 = vld [vmem:[%s7441_s6 + $0x30] sm:$0xff] }
 0xa41   : > { %6007 = vmatprep.subr.mxu0 %v6242_v1 }
 0xa43   : > { %6000 = vmatmul.mubr.msk.f32.vlgmr.msra.gmra.mxu0 %vm1651_vm4, %v3256_v28 }
 0xa44   : > { %6009 = vmatprep.mubr.msk.f32.mxu0 %vm6243_vm0, %v6242_v1 }
 0xa45   : > { %v3675_v30 = vpop.f32.mrf.mxu1 }
 0xa46   : > { %v3676_v31 = vadd.f32 %v5309_v29, %v3675_v30 }
 0xa47   : > { %v5959_v32 = vpop.f32.mrf.mxu1 }
 0xa48   : > { %6008 = vmatpush3.msra.mxu0 %v3676_v31  ;;  %v5339_v32 = vld [vmem:[%s7441_s6 + $0x38] sm:$0xff] }
 0xa49   : > { %6017 = vmatprep.subr.mxu0 %v6242_v1 }
 0xa4d   : > { %v7200_v33 = vpop.f32.mrf.mxu1 }
 0xa4e   : > { %v3816_v21 = vadd.f32 %v5311_v18, %v7200_v33  ;;  %v5347_v18 = vld [vmem:[%s7443_s8 + $0x1] ss:$0 sm:$0xff] }
 0xa4f   : > { %v5981_v34 = vpop.f32.mrf.mxu1 }
 0xad6   : > { %v3891_v35 = vpop.f32.mrf.mxu0 }
 0xad7   : > { %v3892_v36 = vadd.f32 %v3891_v35, %v6726_v51 }
 0xad8   : > { %v5986_v38 = vpop.f32.mrf.mxu0 }
 0xad9   : > { %v4123_v37 = vsel %vm1651_vm4, %v3892_v36, -inf }
 0xada   : > { %4124 = vmax.xlane.f32.xlu0 %v4123_v37 }
 0xae6   : > { %v4043_v39 = vpop.f32.mrf.mxu1 }
 0xae7   : > { %v4044_v40 = vadd.f32 %v4043_v39, %v6726_v51 }
 0xae8   : > { %v5996_v41 = vpop.f32.mrf.mxu1 }
 0xae9   : > { %v4129_v42 = vsel %vm1651_vm4, %v4044_v40, -inf }
 0xaea   : > { %4130 = vmax.xlane.f32.xlu0 %v4129_v42 }
 0xafb   : > { %v3967_v43 = vpop.f32.mrf.mxu0 }
 0xafc   : > { %v3968_v44 = vadd.f32 %v3967_v43, %v6726_v51 }
 0xafd   : > { %v5991_v45 = vpop.f32.mrf.mxu0 }
 0xafe   : > { %v4126_v46 = vsel %vm1651_vm4, %v3968_v44, -inf }
 0xaff   : > { %4127 = vmax.xlane.f32.xlu1 %v4126_v46 }
 0xb03   : > { %v4119_v47 = vpop.f32.mrf.mxu0 }
 0xb04   : > { %v4120_v48 = vadd.f32 %v4119_v47, %v6726_v51 }
 0xb05   : > { %v6001_v49 = vpop.f32.mrf.mxu0 }
 0xb06   : > { %v4132_v50 = vsel %vm1651_vm4, %v4120_v48, -inf }
 0xb07   : > { %4133 = vmax.xlane.f32.xlu1 %v4132_v50  ;;  %v5345_v50 = vld [vmem:[%s7442_s7 + $0x1] ss:$0 sm:$0xff] }
 0xb63   : > { %v4125_v52 = vpop.xlane.xlu0 %4124 }
 0xb64   : > { %v4135_v53 = vsub.f32 %v3892_v36, %v4125_v52 }
 0xb66   : > { %v4139_v54 = vmul.f32 1.442695, %v4135_v53 }
 0xb68   : > { %6160 = vpow2.f32 %v4139_v54 }
 0xb73   : > { %v4131_v55 = vpop.xlane.xlu0 %4130 }
 0xb74   : > { %v4137_v56 = vsub.f32 %v4044_v40, %v4131_v55 }
 0xb75   : > { %v6161_v57 = vpop.eup %6160 }
 0xb76   : > { %v4143_v58 = vmul.f32 1.442695, %v4137_v56  ;;  %v4147_v59 = vsel %vm1651_vm4, %v6161_v57, 0.0 }
 0xb77   : > { %4148 = vadd.xlane.f32.xlu0 %v4147_v59 }
 0xb78   : > { %6162 = vpow2.f32 %v4143_v58 }
 0xb85   : > { %v6163_v60 = vpop.eup %6162 }
 0xb86   : > { %v4153_v13 = vsel %vm1651_vm4, %v6163_v60, 0.0 }
 0xb87   : > { %4154 = vadd.xlane.f32.xlu0 %v4153_v13 }
 0xb88   : > { %v4128_v51 = vpop.xlane.xlu1 %4127 }
 0xb89   : > { %v4136_v14 = vsub.f32 %v3968_v44, %v4128_v51  ;;  %v5353_v51 = vld [vmem:[%s7445_s10 + $0x38] sm:$0xff] }
 0xb8b   : > { %v4141_v61 = vmul.f32 1.442695, %v4136_v14  ;;  %v5352_v14 = vld [vmem:[%s7445_s10 + $0x30] sm:$0xff] }
 0xb8d   : > { %6164 = vpow2.f32 %v4141_v61  ;;  %v5350_v61 = vld [vmem:[%s7445_s10 + $0x20] sm:$0xff] }
 0xb90   : > { %v4134_v62 = vpop.xlane.xlu1 %4133 }
 0xb91   : > { %v4138_v63 = vsub.f32 %v4120_v48, %v4134_v62  ;;  %v5372_v62 = vld [vmem:[%s7447_s12 + $0xf8] sm:$0xff] }
 0xb93   : > { %v4145_v0 = vmul.f32 1.442695, %v4138_v63  ;;  %v5371_v63 = vld [vmem:[%s7447_s12 + $0xf0] sm:$0xff] }
 0xb95   : > { %6166 = vpow2.f32 %v4145_v0  ;;  %v5370_v0 = vld [vmem:[%s7447_s12 + $0xe8] sm:$0xff] }
 0xb9a   : > { %v6165_v2 = vpop.eup %6164 }
 0xb9b   : > { %v4150_v3 = vsel %vm1651_vm4, %v6165_v2, 0.0 }
 0xb9c   : > { %4151 = vadd.xlane.f32.xlu1 %v4150_v3  ;;  %v5368_v3 = vld [vmem:[%s7447_s12 + $0xd8] sm:$0xff] }
 0xba2   : > { %v6167_v4 = vpop.eup %6166 }
 0xba3   : > { %v4156_v5 = vsel %vm1651_vm4, %v6167_v4, 0.0 }
 0xba4   : > { %4157 = vadd.xlane.f32.xlu1 %v4156_v5  ;;  %v5366_v5 = vld [vmem:[%s7447_s12 + $0xc8] sm:$0xff] }
 0xc00   : > { %v4149_v6 = vpop.xlane.xlu0 %4148 }
 0xc01   : > { %6168 = vrcp.f32 %v4149_v6  ;;  %v5365_v6 = vld [vmem:[%s7447_s12 + $0xc0] sm:$0xff] }
 0xc0e   : > { %v6169_v8 = vpop.eup %6168 }
 0xc0f   : > { %v4163_v10 = vmul.f32 %v6169_v8, %v6161_v57  ;;  %v5363_v8 = vld [vmem:[%s7447_s12 + $0xb0] sm:$0xff] }
 0xc10   : > { %v4155_v12 = vpop.xlane.xlu0 %4154 }
 0xc11   : > { %6170 = vrcp.f32 %v4155_v12  ;;  %6005 = vmatmul.mubr.msk.f32.vlgmr.msra.gmra.mxu1 %vm1651_vm4, %v4163_v10  ;;  %v5362_v10 = vld [vmem:[%s7447_s12 + $0xa8] sm:$0xff]  ;;  %v5360_v12 = vld [vmem:[%s7447_s12 + $0x98] sm:$0xff] }
 0xc12   : > { %6013 = vmatpush3.msra.mxu1 %v3746_v11  ;;  %6014 = vmatprep.mubr.msk.f32.mxu1 %vm6243_vm0, %v6242_v1  ;;  %v5361_v11 = vld [vmem:[%s7447_s12 + $0xa0] sm:$0xff] }
 0xc13   : > { %6022 = vmatprep.subr.mxu1 %v6242_v1 }
 0xc1e   : > { %v6171_v15 = vpop.eup %6170 }
 0xc1f   : > { %v4165_v16 = vmul.f32 %v6171_v15, %v6163_v60 }
 0xc21   : > { %6015 = vmatmul.mubr.msk.f32.vlgmr.msra.gmra.mxu1 %vm1651_vm4, %v4165_v16 }
 0xc22   : > { %6024 = vmatprep.mubr.msk.f32.mxu1 %vm6243_vm0, %v6242_v1  ;;  %6023 = vmatpush3.msra.mxu1 %v5336_v25  ;;  %v5358_v25 = vld [vmem:[%s7447_s12 + $0x88] sm:$0xff] }
 0xc23   : > { %6032 = vmatprep.subr.mxu1 %v6242_v1 }
 0xc25   : > { %v4152_v17 = vpop.xlane.xlu1 %4151 }
 0xc26   : > { %6172 = vrcp.f32 %v4152_v17 }
 0xc2d   : > { %v4158_v22 = vpop.xlane.xlu1 %4157 }
 0xc2e   : > { %6174 = vrcp.f32 %v4158_v22 }
 0xc33   : > { %v6173_v19 = vpop.eup %6172 }
 0xc34   : > { %v4164_v20 = vmul.f32 %v6173_v19, %v6165_v2  ;;  %v5369_v2 = vld [vmem:[%s7447_s12 + $0xe0] sm:$0xff] }
 0xc36   : > { %6010 = vmatmul.mubr.msk.f32.vlgmr.msra.gmra.mxu0 %vm1651_vm4, %v4164_v20  ;;  %v5349_v20 = vld [vmem:[%s7444_s9 + $0x1] ss:$0 sm:$0xff] }
 0xc37   : > { %6018 = vmatpush3.msra.mxu0 %v3816_v21  ;;  %6019 = vmatprep.mubr.msk.f32.mxu0 %vm6243_vm0, %v6242_v1 }
 0xc38   : > { %6027 = vmatprep.subr.mxu0 %v6242_v1 }
 0xc3b   : > { %v6175_v23 = vpop.eup %6174 }
 0xc3c   : > { %v4166_v24 = vmul.f32 %v6175_v23, %v6167_v4  ;;  %v5367_v4 = vld [vmem:[%s7447_s12 + $0xd0] sm:$0xff] }
 0xc3e   : > { %6020 = vmatmul.mubr.msk.f32.vlgmr.msra.gmra.mxu0 %vm1651_vm4, %v4166_v24  ;;  %v5359_v24 = vld [vmem:[%s7447_s12 + $0x90] sm:$0xff] }
 0xc3f   : > { %6029 = vmatprep.mubr.msk.f32.mxu0 %vm6243_vm0, %v6242_v1  ;;  %6028 = vmatpush3.msra.mxu0 %v5337_v26  ;;  %v5357_v26 = vld [vmem:[%s7447_s12 + $0x80] sm:$0xff] }
 0xc40   : > { %6037 = vmatprep.subr.mxu0 %v6242_v1 }
 0xcd1   : > { %v4236_v28 = vpop.f32.mrf.mxu1 }
 0xcd2   : > { %6025 = vmatmul.mubr.msk.f32.vlgmr.msra.gmra.mxu1 %vm1651_vm4, %v4236_v28 }
 0xcd3   : > { %v6006_v29 = vpop.f32.mrf.mxu1  ;;  %6033 = vmatpush3.msra.mxu1 %v5338_v27  ;;  %6034 = vmatprep.mubr.msk.f32.mxu1 %vm6243_vm0, %v6242_v1  ;;  %v5355_v27 = vld [vmem:[%s7446_s11 + $0x1] ss:$0 sm:$0xff] }
 0xcd4   : > { %6042 = vmatprep.subr.mxu1 %v6242_v1 }
 0xce1   : > { %v4382_v30 = vpop.f32.mrf.mxu1 }
 0xce2   : > { %6035 = vmatmul.mubr.msk.f32.vlgmr.msra.gmra.mxu1 %vm1651_vm4, %v4382_v30 }
 0xce3   : > { %v6016_v31 = vpop.f32.mrf.mxu1  ;;  %6050 = vmatprep.mubr.msk.f32.mxu1 %vm6243_vm0, %v6242_v1  ;;  %6043 = vmatpush3.msra.mxu1 %v5353_v51 }
 0xce4   : > { %6044 = vmatprep.subr.mxu1 %v6242_v1 }
 0xce5   : > { %6045 = vmatpush3.msra.mxu1 %v5352_v14 }
 0xce6   : > { %6046 = vmatprep.subr.mxu1 %v6242_v1 }
 0xcf6   : > { %v4309_v33 = vpop.f32.mrf.mxu0 }
 0xcf7   : > { %6030 = vmatmul.mubr.msk.f32.vlgmr.msra.gmra.mxu0 %vm1651_vm4, %v4309_v33 }
 0xcf8   : > { %v6011_v34 = vpop.f32.mrf.mxu0  ;;  %6038 = vmatpush3.msra.mxu0 %v5339_v32  ;;  %6039 = vmatprep.mubr.msk.f32.mxu0 %vm6243_vm0, %v6242_v1  ;;  %v5374_v32 = vld [vmem:[%s7448_s13 + $0x1] ss:$0 sm:$0xff] }
 0xcf9   : > { %6053 = vmatprep.subr.mxu0 %v6242_v1 }
 0xcfe   : > { %v4455_v35 = vpop.f32.mrf.mxu0 }
 0xcff   : > { %6040 = vmatmul.mubr.msk.f32.vlgmr.msra.gmra.mxu0 %vm1651_vm4, %v4455_v35 }
 0xd00   : > { %v6021_v36 = vpop.f32.mrf.mxu0  ;;  %6085 = vmatprep.mubr.msk.f32.mxu0 %vm6243_vm0, %v6242_v1  ;;  %6054 = vmatpush3.msra.mxu0 %v5372_v62 }
 0xd01   : > { %6055 = vmatprep.subr.mxu0 %v6242_v1 }
 0xd02   : > { %6056 = vmatpush3.msra.mxu0 %v5371_v63 }
 0xd03   : > { %6057 = vmatprep.subr.mxu0 %v6242_v1 }
 0xd04   : > { %6058 = vmatpush3.msra.mxu0 %v5370_v0 }
 0xd05   : > { %6059 = vmatprep.subr.mxu0 %v6242_v1 }
 0xd06   : > { %6060 = vmatpush3.msra.mxu0 %v5369_v2 }
 0xd07   : > { %6061 = vmatprep.subr.mxu0 %v6242_v1 }
 0xd08   : > { %6062 = vmatpush3.msra.mxu0 %v5368_v3 }
 0xd09   : > { %6063 = vmatprep.subr.mxu0 %v6242_v1 }
 0xd0a   : > { %6064 = vmatpush3.msra.mxu0 %v5367_v4 }
 0xd0b   : > { %6065 = vmatprep.subr.mxu0 %v6242_v1 }
 0xd0c   : > { %6066 = vmatpush3.msra.mxu0 %v5366_v5 }
 0xd0d   : > { %6067 = vmatprep.subr.mxu0 %v6242_v1 }
 0xd0e   : > { %6068 = vmatpush3.msra.mxu0 %v5365_v6 }
 0xd0f   : > { %6069 = vmatprep.subr.mxu0 %v6242_v1 }
 0xd10   : > { %6070 = vmatpush3.msra.mxu0 %v5364_v7 }
 0xd11   : > { %6071 = vmatprep.subr.mxu0 %v6242_v1 }
 0xd12   : > { %6072 = vmatpush3.msra.mxu0 %v5363_v8 }
 0xd13   : > { %6073 = vmatprep.subr.mxu0 %v6242_v1 }
 0xd14   : > { %6074 = vmatpush3.msra.mxu0 %v5362_v10 }
 0xd15   : > { %6075 = vmatprep.subr.mxu0 %v6242_v1 }
 0xd16   : > { %6076 = vmatpush3.msra.mxu0 %v5361_v11 }
 0xd17   : > { %6077 = vmatprep.subr.mxu0 %v6242_v1 }
 0xd18   : > { %6078 = vmatpush3.msra.mxu0 %v5360_v12 }
 0xd19   : > { %6079 = vmatprep.subr.mxu0 %v6242_v1 }
 0xd1a   : > { %6080 = vmatpush3.msra.mxu0 %v5359_v24 }
 0xd1b   : > { %6081 = vmatprep.subr.mxu0 %v6242_v1 }
 0xd1c   : > { %6082 = vmatpush3.msra.mxu0 %v5358_v25 }
 0xd1d   : > { %6083 = vmatprep.subr.mxu0 %v6242_v1 }
 0xd1e   : > { %6084 = vmatpush3.msra.mxu0 %v5357_v26 }
 0xd92   : > { %v4533_v38 = vpop.f32.mrf.mxu1 }
 0xd93   : > { %v4756_v44 = vsel %vm807_vm3, %v4533_v38, 0.0 }
 0xd94   : > { %v6026_v37 = vpop.f32.mrf.mxu1 }
 0xda2   : > { %v4679_v39 = vpop.f32.mrf.mxu1 }
 0xda3   : > { %v4759_v46 = vsel %vm807_vm3, %v4679_v39, 0.0 }
 0xda4   : > { %v6036_v40 = vpop.f32.mrf.mxu1 }
 0xdb7   : > { %v4606_v41 = vpop.f32.mrf.mxu0 }
 0xdb8   : > { %v4757_v42 = vsel %vm807_vm3, %v4606_v41, 0.0 }
 0xdb9   : > { %v6031_v43 = vpop.f32.mrf.mxu0  ;;  %v4758_v45 = vadd.f32 %v4757_v42, %v4756_v44  ;;  %v5020_v44 = vld [vmem:[%s7451_s16 + $0x10] sm:$0xff] }
 0xdba   : > { %v5021_v43 = vld [vmem:[%s7451_s16 + $0x18] sm:$0xff] }
 0xdbb   : > { %v4760_v48 = vadd.f32 %v4759_v46, %v4758_v45  ;;  %v5019_v45 = vld [vmem:[%s7451_s16 + $0x8] sm:$0xff]  ;;  %v5018_v46 = vld [vmem:[%s7451_s16] sm:$0xff] }
 0xdbf   : > { %v4752_v47 = vpop.f32.mrf.mxu0 }
 0xdc0   : > { %v4761_v49 = vsel %vm807_vm3, %v4752_v47, 0.0 }
 0xdc1   : > { %v4762_v52 = vadd.f32 %v4761_v49, %v4760_v48  ;;  %v6041_v53 = vpop.f32.mrf.mxu0 }
 0xdc3   : > { %v4771_v54 = vadd.f32 %v5345_v50, %v4762_v52  ;;  %v5376_v52 = vld [vmem:[%s7449_s14 + $0x1] ss:$0 sm:$0xff] }
 0xdc5   : > { %v4772_v55 = vadd.f32 %v4771_v54, %v6936_v9  ;;  %v5351_v9 = vld [vmem:[%s7445_s10 + $0x28] sm:$0xff]  ;;  %v5378_v54 = vld [vmem:[%s7450_s15 + $0x1] ss:$0 sm:$0xff] }
 0xdc6   : > { %6047 = vmatpush3.msra.mxu1 %v5351_v9 }
 0xdc7   : > { %v4773_v56 = vsel %vm807_vm3, %v4772_v55, 0.0  ;;  %6048 = vmatprep.subr.mxu1 %v6242_v1 }
 0xdc8   : > { %4774 = vadd.xlane.f32.xlu0 %v4773_v56  ;;  %6049 = vmatpush3.msra.mxu1 %v5350_v61 }
 0xdc9   : > { %6088 = vmatprep.subr.mxu1 %v6242_v1 }
 0xe51   : > { %v4775_v57 = vpop.xlane.xlu0 %4774 }
 0xe52   : > { %v4776_v58 = vmul.f32 0.03125, %v4775_v57 }
 0xe54   : > { %v4777_v59 = vsub.f32 %v4772_v55, %v4776_v58 }
 0xe56   : > { %v4778_v60 = vmul.f32 %v4777_v59, %v4777_v59 }
 0xe58   : > { %v4779_v13 = vsel %vm807_vm3, %v4778_v60, 0.0 }
 0xe59   : > { %4780 = vadd.xlane.f32.xlu1 %v4779_v13 }
 0xee2   : > { %v4781_v15 = vpop.xlane.xlu1 %4780 }
 0xee3   : > { %v4782_v16 = vmul.f32 0.03125, %v4781_v15 }
 0xee5   : > { %v4783_v17 = vadd.f32 1e-05, %v4782_v16 }
 0xee7   : > { %6176 = vrsqrt.f32 %v4783_v17 }
 0xef4   : > { %v6177_v22 = vpop.eup %6176 }
 0xef5   : > { %v4785_v19 = vmul.f32 %v6177_v22, %v4777_v59 }
 0xef7   : > { %v4794_v21 = vmul.f32 %v5347_v18, %v4785_v19 }
 0xef9   : > { %v4803_v23 = vadd.f32 %v5349_v20, %v4794_v21 }
 0xefb   : > { %6051 = vmatmul.mubr.msk.f32.vlgmr.msra.gmra.mxu1 %vm807_vm3, %v4803_v23 }
 0xefc   : > { %6096 = vmatprep.mubr.msk.f32.mxu1 %vm6243_vm0, %v6242_v1  ;;  %6089 = vmatpush3.msra.mxu1 %v5021_v43 }
 0xefd   : > { %6090 = vmatprep.subr.mxu1 %v6242_v1 }
 0xefe   : > { %6091 = vmatpush3.msra.mxu1 %v5020_v44 }
 0xeff   : > { %6092 = vmatprep.subr.mxu1 %v6242_v1 }
 0xf00   : > { %6093 = vmatpush3.msra.mxu1 %v5019_v45 }
 0xf01   : > { %6094 = vmatprep.subr.mxu1 %v6242_v1  ;;  %v5379_v1 = vld [vmem:[%s7452_s17] ss:$0 sm:$0xff] }
 0xf02   : > { %6095 = vmatpush3.msra.mxu1 %v5018_v46 }
 0xfbb   : > { %v4886_v28 = vpop.f32.mrf.mxu1 }
 0xfbc   : > { %v4887_v29 = vadd.f32 %v5355_v27, %v4886_v28 }
 0xfbd   : > { %v6052_v30 = vpop.f32.mrf.mxu1 }
 0xfbe   : > { %v4890_v31 = vmax.f32 %v4887_v29, 0.0 }
 0xfc0   : > { %6086 = vmatmul.mubr.f32.vlgmr.msra.gmra.mxu0 %v4890_v31 }
0x1080   : > { %v4982_v33 = vpop.f32.mrf.mxu0 }
0x1081   : > { %v4983_v34 = vadd.f32 %v5374_v32, %v4982_v33 }
0x1082   : > { %v6087_v35 = vpop.f32.mrf.mxu0 }
0x1083   : > { %v4986_v36 = vadd.f32 %v4983_v34, %v4803_v23 }
0x1085   : > { %v4987_v38 = vsel %vm807_vm3, %v4986_v36, 0.0 }
0x1086   : > { %4988 = vadd.xlane.f32.xlu0 %v4987_v38 }
0x110f   : > { %v4989_v37 = vpop.xlane.xlu0 %4988 }
0x1110   : > { %v4990_v39 = vmul.f32 0.03125, %v4989_v37 }
0x1112   : > { %v4991_v40 = vsub.f32 %v4986_v36, %v4990_v39 }
0x1114   : > { %v4992_v41 = vmul.f32 %v4991_v40, %v4991_v40 }
0x1116   : > { %v4993_v42 = vsel %vm807_vm3, %v4992_v41, 0.0 }
0x1117   : > { %4994 = vadd.xlane.f32.xlu1 %v4993_v42 }
0x11a0   : > { %v4995_v47 = vpop.xlane.xlu1 %4994 }
0x11a1   : > { %v4996_v48 = vmul.f32 0.03125, %v4995_v47 }
0x11a3   : > { %v4997_v49 = vadd.f32 1e-05, %v4996_v48 }
0x11a5   : > { %6178 = vrsqrt.f32 %v4997_v49 }
0x11b2   : > { %v6179_v50 = vpop.eup %6178 }
0x11b3   : > { %v4999_v53 = vmul.f32 %v6179_v50, %v4991_v40 }
0x11b5   : > { %v5008_v55 = vmul.f32 %v5376_v52, %v4999_v53 }
0x11b7   : > { %v5017_v56 = vadd.f32 %v5378_v54, %v5008_v55 }
0x11b9   : > { %6097 = vmatmul.mubr.msk.f32.vlgmr.msra.gmra.mxu1 %vm807_vm3, %v5017_v56 }
0x1279   : > { %v5098_v57 = vpop.f32.mrf.mxu1 }
0x127a   : > { %v5099_v58 = vadd.f32 %v5379_v1, %v5098_v57 }
0x127b   : > { %v6098_v59 = vpop.f32.mrf.mxu1 }
0x127c   : > { %5102 = vst [vmem:[%s577_s3] sm:$0xff] %v5099_v58 }
0x127d   : > { %6193 = shalt.err (!%p6190_p3)
}
0x127e   : > { %s6194_s3 = scalar_lea.hbm %s7400_s19, 128  ;;  %s6198_s29 = scalar_lea.hbm %s7453_s18, 256 }
0x127f   : > { %p6195_p4 = scmp.ne.s32.totalorder %s7400_s19, %s6194_s3  ;;  %p6199_p9 = scmp.lt.s32.totalorder %s7400_s19, %s7453_s18 }
0x1280   : > { %p6200_p10 = scmp.lt.s32.totalorder %s6198_s29, %s6194_s3 }
0x1281   : > { %p6196_p7 = pnand %p6195_p4, %p6378_p5 }
0x1282   : > { %p6201_p11 = por %p6200_p10, %p6199_p9 }
0x1283   : > { %p6197_p8 = pneg %p6196_p7 }
0x1285   : > { %p6202_p12 = pnand %p6201_p11, %p6197_p8 }
0x1287   : > { %6205 = shalt.err (!%p6202_p12)
}
0x1288   : > { %6099 = dma.vmem_to_hbm [thread:$0]  (%p6378_p5), %s5118_s24, 128, %s7400_s19, %s5104_s26  }
0x1289 PF: > { %p6105_p13 = scmp.ge.s32.totalorder %s6240_s30, 2  ;;  %s5129_s5 = sand.u32 1, %s6228_s27  }
0x128a   : > { %s5130_s21 = scalar_lea.sflag [#allocation3], %s5129_s5 }
0x128b   : > { %p6102_p0 = pnand %p6105_p13, %p6382_p6 }
0x128d   : > { %p6103_p1 = pneg %p6102_p0 }
0x128f   : > { %6223 = dma.done.wait (%p6103_p1), %s5130_s21, 128  }
0x1290   : > { %6225 = vsyncadd (%p6103_p1), %s5130_s21, 4294967168  ;;  %s7476_s30 = sld [smem:[#allocation6_spill]]  ;;  %s7479_s27 = smov %s6232_s28 }
0x1291   : > { %s7477_s0 = sld [smem:[#allocation5_spill]] }
0x1292   : > { %s7478_s29 = sld [smem:[#allocation7_spill]] }
0x1296   : > { %p28_p2 = scmp.ge.s32.totalorder %s7476_s30, 4  }
0x1297   : > { %s7480_s28 = smov %s7477_s0 }
0x1298   :  { %30 = sbr.rel (!%p28_p2) target bundleno = 10 (0xa), region = 142 }
0x129d   :  { %5135 = vsyncpa [#allocation3], 1 }
0x129e   :  { %5137 = vsyncpa [#allocation3 + $0x1], 1 }

</bundles_post_ra>
